<compile_context>
chip_gen: v7x
topology: tpu7x:2x2x1
jax: 0.10.0
libtpu: 0.0.40
codegen_flags: <defaults>
</compile_context>

<pallas_src>
from functools import partial

import jax
import jax.numpy as jnp
from jax import lax
from jax.experimental import pallas as pl
from jax.experimental.pallas import tpu as pltpu


# ----------------------------------------------------------------------------
# Kernel 1: 4x bilinear downsample as a single MXU matmul against a constant
# selection matrix.  x block: (TM, H*W), S: (H*W, nH*nW), out: (TM, nH*nW).
# ----------------------------------------------------------------------------
def _down4_matmul_kernel(x_ref, s_ref, o_ref):
    o_ref[...] = jnp.dot(
        x_ref[...], s_ref[...], preferred_element_type=jnp.float32
    )


def _down4_matrix(H, W):
    """Constant (H*W, nH*nW) selection matrix for exact 4x bilinear downsample."""
    nH, nW = H // 4, W // 4
    h = jnp.arange(H)[:, None]
    i4 = 4 * jnp.arange(nH)[None, :]
    rsel = (h == i4 + 1) | (h == i4 + 2)                     # (H, nH)
    w = jnp.arange(W)[:, None]
    j4 = 4 * jnp.arange(nW)[None, :]
    csel = (w == j4 + 1) | (w == j4 + 2)                     # (W, nW)
    sel = (rsel[:, None, :, None] & csel[None, :, None, :]).astype(jnp.float32)
    return 0.25 * sel.reshape(H * W, nH * nW)


def _pick_tile_rows(M, HW, budget_bytes=4 << 20):
    """Largest row-tile (multiple of 8 dividing M, or M itself) within ~4 MiB."""
    cap = max(8, budget_bytes // max(4 * HW, 1))
    if M <= cap:
        return M
    for d in range(min(cap, M), 7, -1):
        if M % d == 0 and d % 8 == 0:
            return d
    # TODO(synk): for very large, awkwardly-factored M*H*W a padded grid would
    # be preferable; fall back to a single block here.
    return M


def bilinear_down4(x):
    """x: (B, C, T, H, W) float32, H % 4 == 0, W % 4 == 0 -> (B, C, T, H//4, W//4)."""
    B, C, T, H, W = x.shape
    assert H % 4 == 0 and W % 4 == 0, "kernel assumes H, W divisible by 4"
    nH, nW = H // 4, W // 4
    M = B * C * T
    HW, P = H * W, nH * nW

    xf = x.astype(jnp.float32).reshape(M, HW)          # free reshape, no transpose
    S = _down4_matrix(H, W)                            # (HW, P) constant
    TM = _pick_tile_rows(M, HW)

    out = pl.pallas_call(
        _down4_matmul_kernel,
        grid=(M // TM,),
        in_specs=[
            pl.BlockSpec((TM, HW), lambda m: (m, 0)),
            pl.BlockSpec((HW, P), lambda m: (0, 0)),   # constant block
        ],
        out_specs=pl.BlockSpec((TM, P), lambda m: (m, 0)),
        out_shape=jax.ShapeDtypeStruct((M, P), jnp.float32),
        compiler_params=pltpu.CompilerParams(
            dimension_semantics=("parallel",),
            vmem_limit_bytes=32 << 20,
        ),
    )(xf, S)
    return out.reshape(B, C, T, nH, nW)


# ----------------------------------------------------------------------------
# Kernel 2: fused Lloyd KMeans over a VMEM-resident point cloud, batched over B
# via a "parallel" grid axis.  Emits per-cluster intra-distance sums, counts and
# final centroids; the tiny KxK Davies-Bouldin reduction stays in jnp.
# ----------------------------------------------------------------------------
def _kmeans_stats_kernel(kk_ref, p_ref, pt_ref, c0_ref,
                         ssum_ref, cnt_ref, cent_ref, *, n_valid, iters):
    p = p_ref[0]                                        # (Np, C)  f32
    pT = pt_ref[0]                                      # (C, Np)  f32
    Np, _C = p.shape
    Kmax = c0_ref.shape[2]
    k_valid = kk_ref[0]                                 # (1, 1)   f32

    # Hoisted loop-invariant masks / norms.
    row_ids = lax.broadcasted_iota(jnp.int32, (Np, 1), 0)
    valid_row = row_ids < n_valid                                        # (Np,1)
    col_ids = lax.broadcasted_iota(jnp.int32, (Np, Kmax), 1).astype(jnp.float32)
    col_ok = col_ids < k_valid                                           # (Np,Kmax)
    pn = jnp.sum(p * p, axis=1, keepdims=True)                           # (Np,1)
    big = jnp.float32(1e30)

    def assign(ct):
        # squared distances via |p|^2 + |c|^2 - 2 p.c  (MXU for the cross term)
        g = lax.dot_general(p, ct, (((1,), (0,)), ((), ())),
                            preferred_element_type=jnp.float32)          # (Np,Kmax)
        cn = jnp.sum(ct * ct, axis=0, keepdims=True)                     # (1,Kmax)
        d2 = jnp.maximum(pn + cn - 2.0 * g, 0.0)
        d2 = jnp.where(col_ok, d2, big)                                  # mask pad K
        mind2 = jnp.min(d2, axis=1, keepdims=True)                       # (Np,1)
        # first-index tie-break argmin without argmin/cumsum primitives
        first = jnp.min(jnp.where(d2 <= mind2, col_ids, jnp.float32(Kmax)),
                        axis=1, keepdims=True)                           # (Np,1)
        oh = jnp.where((col_ids == first) & valid_row, 1.0, 0.0)         # (Np,Kmax)
        return oh, mind2

    def body(_, ct):
        oh, _ = assign(ct)
        counts = jnp.sum(oh, axis=0, keepdims=True)                      # (1,Kmax)
        sums = lax.dot_general(pT, oh, (((1,), (0,)), ((), ())),
                               preferred_element_type=jnp.float32)       # (C,Kmax)
        return jnp.where(counts > 0.5, sums / jnp.maximum(counts, 1.0), ct)

    ct = lax.fori_loop(0, iters, body, c0_ref[0])

    oh, mind2 = assign(ct)
    counts = jnp.sum(oh, axis=0, keepdims=True)                          # (1,Kmax)
    d_own = jnp.where(valid_row, jnp.sqrt(jnp.maximum(mind2, 0.0)), 0.0)
    s_sum = jnp.sum(oh * d_own, axis=0, keepdims=True)                   # (1,Kmax)

    ssum_ref[0] = s_sum
    cnt_ref[0] = counts
    cent_ref[0] = ct


def _kmeans_stats(kk_arr, pts, ptsT, cents0T, *, n_valid, iters):
    """kk_arr: (B,1,1) f32, pts: (B,Np,C), ptsT: (B,C,Np), cents0T: (B,C,Kmax)."""
    B, Np, C = pts.shape
    Kmax = cents0T.shape[2]
    # TODO(synk): if Np*C*4 ever exceeds VMEM, tile Np with a carried accumulator.
    kernel = partial(_kmeans_stats_kernel, n_valid=n_valid, iters=iters)
    out_shape = (
        jax.ShapeDtypeStruct((B, 1, Kmax), jnp.float32),
        jax.ShapeDtypeStruct((B, 1, Kmax), jnp.float32),
        jax.ShapeDtypeStruct((B, C, Kmax), jnp.float32),
    )
    return pl.pallas_call(
        kernel,
        grid=(B,),
        in_specs=[
            pl.BlockSpec((1, 1, 1), lambda b: (b, 0, 0)),      # K for this batch
            pl.BlockSpec((1, Np, C), lambda b: (b, 0, 0)),     # points
            pl.BlockSpec((1, C, Np), lambda b: (b, 0, 0)),     # points^T
            pl.BlockSpec((1, C, Kmax), lambda b: (b, 0, 0)),   # init centroids
        ],
        out_specs=(
            pl.BlockSpec((1, 1, Kmax), lambda b: (b, 0, 0)),
            pl.BlockSpec((1, 1, Kmax), lambda b: (b, 0, 0)),
            pl.BlockSpec((1, C, Kmax), lambda b: (b, 0, 0)),
        ),
        out_shape=out_shape,
        compiler_params=pltpu.CompilerParams(
            dimension_semantics=("parallel",),
            vmem_limit_bytes=32 << 20,
        ),
    )(kk_arr, pts, ptsT, cents0T)


# ----------------------------------------------------------------------------
# Davies-Bouldin from the fused-kernel statistics (tiny KxK math, plain jnp).
# ----------------------------------------------------------------------------
def _db_scores(s_sum, counts, cents_ct, kk_f, Kmax):
    cnt = counts[:, 0, :]                                     # (B, Kmax)
    S = s_sum[:, 0, :] / jnp.maximum(cnt, 1.0)                # (B, Kmax)
    kmask = jnp.arange(Kmax, dtype=jnp.float32)[None, :] < kk_f[:, None]
    present = (cnt > 0.5) & kmask                             # (B, Kmax)
    c = jnp.swapaxes(cents_ct, 1, 2)                          # (B, Kmax, C)
    diff = c[:, :, None, :] - c[:, None, :, :]
    Mc = jnp.sqrt(jnp.maximum(jnp.sum(diff * diff, axis=-1), 0.0))   # (B,K,K)
    Msafe = jnp.where(Mc <= 0.0, jnp.inf, Mc)
    R = (S[:, :, None] + S[:, None, :]) / Msafe
    R = jnp.where(present[:, None, :], R, 0.0)
    per_i = jnp.where(present, jnp.max(R, axis=2), 0.0)       # (B, Kmax)
    n_present = jnp.sum(present.astype(jnp.float32), axis=1)  # (B,)
    db = jnp.sum(per_i, axis=1) / jnp.maximum(n_present, 1.0)
    max_S = jnp.max(jnp.where(present, S, 0.0), axis=1)
    pair_ok = present[:, :, None] & present[:, None, :]
    max_Mc = jnp.max(jnp.where(pair_ok, Mc, 0.0), axis=(1, 2))
    ok = (n_present > 1.5) & (max_S > 1e-8) & (max_Mc > 1e-8)
    return jnp.where(ok, db, 0.0)                             # (B,)


# ----------------------------------------------------------------------------
# Full QCC forward
# ----------------------------------------------------------------------------
@partial(jax.jit, static_argnames=("kk", "iters"))
def _qcc_impl(x, kk, iters):
    B, C, T, H, W = x.shape
    small = bilinear_down4(x)                                 # (B, C, T, H//4, W//4)
    nH, nW = H // 4, W // 4
    N = T * nH * nW
    # matches tensor[i].permute(1, 2, 3, 0).reshape(-1, C)
    pts = jnp.transpose(small, (0, 2, 3, 4, 1)).reshape(B, N, C).astype(jnp.float32)

    Kmax = max(1, max(kk))
    # deterministic evenly-spaced init (see TODO at top of file)
    init_rows = []
    for b in range(B):
        Kb = max(1, int(kk[b]))
        stride = max(1, N // Kb)
        init_rows.append([min(k * stride, N - 1) for k in range(Kb)]
                         + [0] * (Kmax - Kb))
    init_idx = jnp.asarray(init_rows, jnp.int32)              # (B, Kmax)
    cents0 = pts[jnp.arange(B)[:, None], init_idx]            # (B, Kmax, C)
    cents0T = jnp.swapaxes(cents0, 1, 2)                      # (B, C, Kmax)

    Np = ((N + 7) // 8) * 8
    if Np != N:   # pad rows are masked inside the kernel
        pts = jnp.concatenate([pts, jnp.zeros((B, Np - N, C), pts.dtype)], axis=1)
    ptsT = jnp.swapaxes(pts, 1, 2)                            # (B, C, Np)

    kk_f = jnp.asarray(kk, jnp.float32)
    kk_arr = kk_f.reshape(B, 1, 1)

    s_sum, counts, cents = _kmeans_stats(kk_arr, pts, ptsT, cents0T,
                                         n_valid=N, iters=iters)
    db = _db_scores(s_sum, counts, cents, kk_f, Kmax)
    return 1.0 + jnp.mean(db)


def qcc_forward(x, KK, kmeans_iters=25):
    """x: (B, C, T, H, W) float32; KK: list of Python ints of length B."""
    return _qcc_impl(x, tuple(int(k) for k in KK), int(kmeans_iters))


if __name__ == "__main__":
    key = jax.random.PRNGKey(0)
    B, C, T, H, W = 2, 4, 8, 16, 16
    x = jax.random.normal(key, (B, C, T, H, W), dtype=jnp.float32)
    KK = [2, 3]

    out = qcc_forward(x, KK)
    out = jax.block_until_ready(out)
    assert out.shape == () and bool(jnp.isfinite(out))
    print("KERNEL_OK")
</pallas_src>

<mosaic_0001>
module attributes {stable_mosaic.version = 11 : i64} {
  func.func @_down4_matmul_kernel(%arg0: i32, %arg1: memref<64x256xf32, #tpu.memory_space<vmem>>, %arg2: memref<256x16xf32, #tpu.memory_space<vmem>>, %arg3: memref<64x16xf32, #tpu.memory_space<vmem>>) attributes {dimension_semantics = [#tpu.dimension_semantics<parallel>], iteration_bounds = array<i64: 1>, scalar_prefetch = 0 : i64, scratch_operands = 0 : i64, tpu.core_type = #tpu.core_type<tc>, window_params = [{transform_indices = @transform_0, window_bounds = array<i64: 64, 256>}, {pipeline_mode = #tpu.pipeline_mode<synchronous>, transform_indices = @transform_1, window_bounds = array<i64: 256, 16>}, {transform_indices = @transform_2, window_bounds = array<i64: 64, 16>}]} {
    %c0 = arith.constant 0 : index
    %c0_0 = arith.constant 0 : index
    %0 = vector.load %arg1[%c0, %c0_0] : memref<64x256xf32, #tpu.memory_space<vmem>>, vector<64x256xf32>
    %c0_1 = arith.constant 0 : index
    %c0_2 = arith.constant 0 : index
    %1 = vector.load %arg2[%c0_1, %c0_2] : memref<256x16xf32, #tpu.memory_space<vmem>>, vector<256x16xf32>
    %cst = arith.constant dense<0.000000e+00> : vector<64x16xf32>
    %2 = tpu.matmul %0, %1, %cst {dimension_numbers = #tpu.dot_dimension_numbers<[1], [0], [0], [1], [0, 0, 1, 1], [], []>} : vector<64x256xf32>, vector<256x16xf32>, vector<64x16xf32> -> vector<64x16xf32>
    %c0_3 = arith.constant 0 : index
    %c0_4 = arith.constant 0 : index
    %3 = vector.load %arg3[%c0_3, %c0_4] : memref<64x16xf32, #tpu.memory_space<vmem>>, vector<64x16xf32>
    tpu.vector_store %arg3[%c0_3, %c0_4], %2 {strides = array<i32>} : memref<64x16xf32, #tpu.memory_space<vmem>>, vector<64x16xf32>,
    return
  }
  func.func @transform_0(%arg0: i32) -> (i32, i32) {
    %c0_i32 = arith.constant 0 : i32
    %c0_i32_0 = arith.constant 0 : i32
    return %arg0, %c0_i32 : i32, i32
  }
  func.func @transform_1(%arg0: i32) -> (i32, i32) {
    %c0_i32 = arith.constant 0 : i32
    %c0_i32_0 = arith.constant 0 : i32
    %c0_i32_1 = arith.constant 0 : i32
    return %c0_i32, %c0_i32_0 : i32, i32
  }
  func.func @transform_2(%arg0: i32) -> (i32, i32) {
    %c0_i32 = arith.constant 0 : i32
    %c0_i32_0 = arith.constant 0 : i32
    return %arg0, %c0_i32 : i32, i32
  }
}

module attributes {stable_mosaic.version = 11 : i64} {
  func.func @_kmeans_stats_kernel(%arg0: i32, %arg1: memref<1x1x1xf32, #tpu.memory_space<vmem>>, %arg2: memref<1x128x4xf32, #tpu.memory_space<vmem>>, %arg3: memref<1x4x128xf32, #tpu.memory_space<vmem>>, %arg4: memref<1x4x3xf32, #tpu.memory_space<vmem>>, %arg5: memref<1x1x3xf32, #tpu.memory_space<vmem>>, %arg6: memref<1x1x3xf32, #tpu.memory_space<vmem>>, %arg7: memref<1x4x3xf32, #tpu.memory_space<vmem>>) attributes {dimension_semantics = [#tpu.dimension_semantics<parallel>], iteration_bounds = array<i64: 2>, scalar_prefetch = 0 : i64, scratch_operands = 0 : i64, tpu.core_type = #tpu.core_type<tc>, window_params = [{transform_indices = @transform_0, window_bounds = array<i64: 1, 1, 1>}, {transform_indices = @transform_1, window_bounds = array<i64: 1, 128, 4>}, {transform_indices = @transform_2, window_bounds = array<i64: 1, 4, 128>}, {transform_indices = @transform_3, window_bounds = array<i64: 1, 4, 3>}, {transform_indices = @transform_4, window_bounds = array<i64: 1, 1, 3>}, {transform_indices = @transform_5, window_bounds = array<i64: 1, 1, 3>}, {transform_indices = @transform_6, window_bounds = array<i64: 1, 4, 3>}]} {
    %c0 = arith.constant 0 : index
    %c0_0 = arith.constant 0 : index
    %c0_1 = arith.constant 0 : index
    %0 = vector.load %arg2[%c0, %c0_0, %c0_1] : memref<1x128x4xf32, #tpu.memory_space<vmem>>, vector<1x128x4xf32>
    %1 = vector.shape_cast %0 : vector<1x128x4xf32> to vector<128x4xf32>
    %c0_2 = arith.constant 0 : index
    %c0_3 = arith.constant 0 : index
    %c0_4 = arith.constant 0 : index
    %2 = vector.load %arg3[%c0_2, %c0_3, %c0_4] : memref<1x4x128xf32, #tpu.memory_space<vmem>>, vector<1x4x128xf32>
    %3 = vector.shape_cast %2 : vector<1x4x128xf32> to vector<4x128xf32>
    %c0_5 = arith.constant 0 : index
    %c0_6 = arith.constant 0 : index
    %c0_7 = arith.constant 0 : index
    %4 = vector.load %arg1[%c0_5, %c0_6, %c0_7] : memref<1x1x1xf32, #tpu.memory_space<vmem>>, vector<1x1x1xf32>
    %5 = vector.shape_cast %4 : vector<1x1x1xf32> to vector<1x1xf32>
    %6 = tpu.iota {dimensions = array<i32: 0>} : vector<128x1xi32>
    %c128_i32 = arith.constant 128 : i32
    %7 = vector.broadcast %c128_i32 : i32 to vector<128x1xi32>
    %8 = arith.cmpi slt, %6, %7 : vector<128x1xi32>
    %9 = tpu.iota {dimensions = array<i32: 1>} : vector<128x3xi32>
    %10 = arith.sitofp %9 : vector<128x3xi32> to vector<128x3xf32>
    %11 = vector.broadcast %5 : vector<1x1xf32> to vector<128x3xf32>
    %12 = arith.cmpf olt, %10, %11 : vector<128x3xf32>
    %13 = arith.mulf %1, %1 : vector<128x4xf32>
    %cst = arith.constant dense<0.000000e+00> : vector<128xf32>
    %14 = vector.multi_reduction <add>, %13, %cst [1] : vector<128x4xf32> to vector<128xf32>
    %15 = vector.shape_cast %14 : vector<128xf32> to vector<128x1xf32>
    %c0_8 = arith.constant 0 : index
    %c0_9 = arith.constant 0 : index
    %c0_10 = arith.constant 0 : index
    %16 = vector.load %arg4[%c0_8, %c0_9, %c0_10] : memref<1x4x3xf32, #tpu.memory_space<vmem>>, vector<1x4x3xf32>
    %17 = vector.shape_cast %16 : vector<1x4x3xf32> to vector<4x3xf32>
    %cst_11 = arith.constant 1.000000e+30 : f32
    %c0_i32 = arith.constant 0 : i32
    %c25_i32 = arith.constant 25 : i32
    %18 = arith.addi %c0_i32, %c25_i32 : i32
    %c1_i32 = arith.constant 1 : i32
    %19 = scf.for %arg8 = %c0_i32 to %18 step %c1_i32 iter_args(%arg9 = %17) -> (vector<4x3xf32>)  : i32 {
      %cst_35 = arith.constant dense<0.000000e+00> : vector<128x3xf32>
      %69 = tpu.matmul %1, %arg9, %cst_35 {dimension_numbers = #tpu.dot_dimension_numbers<[1], [0], [0], [1], [0, 0, 1, 1], [], []>} : vector<128x4xf32>, vector<4x3xf32>, vector<128x3xf32> -> vector<128x3xf32>
      %70 = arith.mulf %arg9, %arg9 : vector<4x3xf32>
      %cst_36 = arith.constant dense<0.000000e+00> : vector<3xf32>
      %71 = vector.multi_reduction <add>, %70, %cst_36 [0] : vector<4x3xf32> to vector<3xf32>
      %72 = vector.shape_cast %71 : vector<3xf32> to vector<1x3xf32>
      %73 = vector.broadcast %15 : vector<128x1xf32> to vector<128x3xf32>
      %74 = vector.broadcast %72 : vector<1x3xf32> to vector<128x3xf32>
      %75 = arith.addf %73, %74 : vector<128x3xf32>
      %cst_37 = arith.constant 2.000000e+00 : f32
      %76 = vector.broadcast %cst_37 : f32 to vector<128x3xf32>
      %77 = arith.mulf %76, %69 : vector<128x3xf32>
      %78 = arith.subf %75, %77 : vector<128x3xf32>
      %cst_38 = arith.constant 0.000000e+00 : f32
      %79 = vector.broadcast %cst_38 : f32 to vector<128x3xf32>
      %80 = arith.maximumf %78, %79 : vector<128x3xf32>
      %81 = vector.broadcast %cst_11 : f32 to vector<128x3xf32>
      %82 = arith.select %12, %80, %81 : vector<128x3xi1>, vector<128x3xf32>
      %cst_39 = arith.constant dense<0x7F800000> : vector<128xf32>
      %83 = vector.multi_reduction <minimumf>, %82, %cst_39 [1] : vector<128x3xf32> to vector<128xf32>
      %84 = vector.shape_cast %83 : vector<128xf32> to vector<128x1xf32>
      %85 = vector.broadcast %84 : vector<128x1xf32> to vector<128x3xf32>
      %86 = arith.cmpf ole, %82, %85 : vector<128x3xf32>
      %cst_40 = arith.constant 3.000000e+00 : f32
      %87 = vector.broadcast %cst_40 : f32 to vector<128x3xf32>
      %88 = arith.select %86, %10, %87 : vector<128x3xi1>, vector<128x3xf32>
      %cst_41 = arith.constant dense<0x7F800000> : vector<128xf32>
      %89 = vector.multi_reduction <minimumf>, %88, %cst_41 [1] : vector<128x3xf32> to vector<128xf32>
      %90 = vector.shape_cast %89 : vector<128xf32> to vector<128x1xf32>
      %91 = vector.broadcast %90 : vector<128x1xf32> to vector<128x3xf32>
      %92 = arith.cmpf oeq, %10, %91 : vector<128x3xf32>
      %93 = vector.broadcast %8 : vector<128x1xi1> to vector<128x3xi1>
      %94 = arith.andi %92, %93 : vector<128x3xi1>
      %cst_42 = arith.constant 1.000000e+00 : f32
      %cst_43 = arith.constant 0.000000e+00 : f32
      %95 = vector.broadcast %cst_42 : f32 to vector<128x3xf32>
      %96 = vector.broadcast %cst_43 : f32 to vector<128x3xf32>
      %97 = arith.select %94, %95, %96 : vector<128x3xi1>, vector<128x3xf32>
      %cst_44 = arith.constant dense<0.000000e+00> : vector<3xf32>
      %98 = vector.multi_reduction <add>, %97, %cst_44 [0] : vector<128x3xf32> to vector<3xf32>
      %99 = vector.shape_cast %98 : vector<3xf32> to vector<1x3xf32>
      %cst_45 = arith.constant dense<0.000000e+00> : vector<4x3xf32>
      %100 = tpu.matmul %3, %97, %cst_45 {dimension_numbers = #tpu.dot_dimension_numbers<[1], [0], [0], [1], [0, 0, 1, 1], [], []>} : vector<4x128xf32>, vector<128x3xf32>, vector<4x3xf32> -> vector<4x3xf32>
      %cst_46 = arith.constant 5.000000e-01 : f32
      %101 = vector.broadcast %cst_46 : f32 to vector<1x3xf32>
      %102 = arith.cmpf ogt, %99, %101 : vector<1x3xf32>
      %cst_47 = arith.constant 1.000000e+00 : f32
      %103 = vector.broadcast %cst_47 : f32 to vector<1x3xf32>
      %104 = arith.maximumf %99, %103 : vector<1x3xf32>
      %105 = vector.broadcast %104 : vector<1x3xf32> to vector<4x3xf32>
      %106 = arith.divf %100, %105 : vector<4x3xf32>
      %107 = vector.shape_cast %102 : vector<1x3xi1> to vector<1x3xi1>
      %108 = vector.broadcast %107 : vector<1x3xi1> to vector<4x3xi1>
      %109 = arith.select %108, %106, %arg9 : vector<4x3xi1>, vector<4x3xf32>
      scf.yield %109 : vector<4x3xf32>
    }
    %cst_12 = arith.constant dense<0.000000e+00> : vector<128x3xf32>
    %20 = tpu.matmul %1, %19, %cst_12 {dimension_numbers = #tpu.dot_dimension_numbers<[1], [0], [0], [1], [0, 0, 1, 1], [], []>} : vector<128x4xf32>, vector<4x3xf32>, vector<128x3xf32> -> vector<128x3xf32>
    %21 = arith.mulf %19, %19 : vector<4x3xf32>
    %cst_13 = arith.constant dense<0.000000e+00> : vector<3xf32>
    %22 = vector.multi_reduction <add>, %21, %cst_13 [0] : vector<4x3xf32> to vector<3xf32>
    %23 = vector.shape_cast %22 : vector<3xf32> to vector<1x3xf32>
    %24 = vector.broadcast %15 : vector<128x1xf32> to vector<128x3xf32>
    %25 = vector.broadcast %23 : vector<1x3xf32> to vector<128x3xf32>
    %26 = arith.addf %24, %25 : vector<128x3xf32>
    %cst_14 = arith.constant 2.000000e+00 : f32
    %27 = vector.broadcast %cst_14 : f32 to vector<128x3xf32>
    %28 = arith.mulf %27, %20 : vector<128x3xf32>
    %29 = arith.subf %26, %28 : vector<128x3xf32>
    %cst_15 = arith.constant 0.000000e+00 : f32
    %30 = vector.broadcast %cst_15 : f32 to vector<128x3xf32>
    %31 = arith.maximumf %29, %30 : vector<128x3xf32>
    %cst_16 = arith.constant 1.000000e+30 : f32
    %32 = vector.broadcast %cst_16 : f32 to vector<128x3xf32>
    %33 = arith.select %12, %31, %32 : vector<128x3xi1>, vector<128x3xf32>
    %cst_17 = arith.constant dense<0x7F800000> : vector<128xf32>
    %34 = vector.multi_reduction <minimumf>, %33, %cst_17 [1] : vector<128x3xf32> to vector<128xf32>
    %35 = vector.shape_cast %34 : vector<128xf32> to vector<128x1xf32>
    %36 = vector.broadcast %35 : vector<128x1xf32> to vector<128x3xf32>
    %37 = arith.cmpf ole, %33, %36 : vector<128x3xf32>
    %cst_18 = arith.constant 3.000000e+00 : f32
    %38 = vector.broadcast %cst_18 : f32 to vector<128x3xf32>
    %39 = arith.select %37, %10, %38 : vector<128x3xi1>, vector<128x3xf32>
    %cst_19 = arith.constant dense<0x7F800000> : vector<128xf32>
    %40 = vector.multi_reduction <minimumf>, %39, %cst_19 [1] : vector<128x3xf32> to vector<128xf32>
    %41 = vector.shape_cast %40 : vector<128xf32> to vector<128x1xf32>
    %42 = vector.broadcast %41 : vector<128x1xf32> to vector<128x3xf32>
    %43 = arith.cmpf oeq, %10, %42 : vector<128x3xf32>
    %44 = vector.broadcast %8 : vector<128x1xi1> to vector<128x3xi1>
    %45 = arith.andi %43, %44 : vector<128x3xi1>
    %cst_20 = arith.constant 1.000000e+00 : f32
    %cst_21 = arith.constant 0.000000e+00 : f32
    %46 = vector.broadcast %cst_20 : f32 to vector<128x3xf32>
    %47 = vector.broadcast %cst_21 : f32 to vector<128x3xf32>
    %48 = arith.select %45, %46, %47 : vector<128x3xi1>, vector<128x3xf32>
    %cst_22 = arith.constant dense<0.000000e+00> : vector<3xf32>
    %49 = vector.multi_reduction <add>, %48, %cst_22 [0] : vector<128x3xf32> to vector<3xf32>
    %50 = vector.shape_cast %49 : vector<3xf32> to vector<1x3xf32>
    %cst_23 = arith.constant 0.000000e+00 : f32
    %51 = vector.broadcast %cst_23 : f32 to vector<128x1xf32>
    %52 = arith.maximumf %35, %51 : vector<128x1xf32>
    %53 = math.sqrt %52 : vector<128x1xf32>
    %cst_24 = arith.constant 0.000000e+00 : f32
    %54 = vector.broadcast %cst_24 : f32 to vector<128x1xf32>
    %55 = arith.select %8, %53, %54 : vector<128x1xi1>, vector<128x1xf32>
    %56 = vector.broadcast %55 : vector<128x1xf32> to vector<128x3xf32>
    %57 = arith.mulf %48, %56 : vector<128x3xf32>
    %cst_25 = arith.constant dense<0.000000e+00> : vector<3xf32>
    %58 = vector.multi_reduction <add>, %57, %cst_25 [0] : vector<128x3xf32> to vector<3xf32>
    %59 = vector.shape_cast %58 : vector<3xf32> to vector<1x3xf32>
    %c0_26 = arith.constant 0 : index
    %c0_27 = arith.constant 0 : index
    %c0_28 = arith.constant 0 : index
    %60 = vector.load %arg5[%c0_26, %c0_27, %c0_28] : memref<1x1x3xf32, #tpu.memory_space<vmem>>, vector<1x1x3xf32>
    %61 = vector.shape_cast %60 : vector<1x1x3xf32> to vector<1x3xf32>
    %62 = vector.shape_cast %59 : vector<1x3xf32> to vector<1x1x3xf32>
    tpu.vector_store %arg5[%c0_26, %c0_27, %c0_28], %62 {strides = array<i32>} : memref<1x1x3xf32, #tpu.memory_space<vmem>>, vector<1x1x3xf32>,
    %c0_29 = arith.constant 0 : index
    %c0_30 = arith.constant 0 : index
    %c0_31 = arith.constant 0 : index
    %63 = vector.load %arg6[%c0_29, %c0_30, %c0_31] : memref<1x1x3xf32, #tpu.memory_space<vmem>>, vector<1x1x3xf32>
    %64 = vector.shape_cast %63 : vector<1x1x3xf32> to vector<1x3xf32>
    %65 = vector.shape_cast %50 : vector<1x3xf32> to vector<1x1x3xf32>
    tpu.vector_store %arg6[%c0_29, %c0_30, %c0_31], %65 {strides = array<i32>} : memref<1x1x3xf32, #tpu.memory_space<vmem>>, vector<1x1x3xf32>,
    %c0_32 = arith.constant 0 : index
    %c0_33 = arith.constant 0 : index
    %c0_34 = arith.constant 0 : index
    %66 = vector.load %arg7[%c0_32, %c0_33, %c0_34] : memref<1x4x3xf32, #tpu.memory_space<vmem>>, vector<1x4x3xf32>
    %67 = vector.shape_cast %66 : vector<1x4x3xf32> to vector<4x3xf32>
    %68 = vector.shape_cast %19 : vector<4x3xf32> to vector<1x4x3xf32>
    tpu.vector_store %arg7[%c0_32, %c0_33, %c0_34], %68 {strides = array<i32>} : memref<1x4x3xf32, #tpu.memory_space<vmem>>, vector<1x4x3xf32>,
    return
  }
  func.func @transform_0(%arg0: i32) -> (i32, i32, i32) {
    %c0_i32 = arith.constant 0 : i32
    %c0_i32_0 = arith.constant 0 : i32
    %c0_i32_1 = arith.constant 0 : i32
    return %arg0, %c0_i32, %c0_i32_0 : i32, i32, i32
  }
  func.func @transform_1(%arg0: i32) -> (i32, i32, i32) {
    %c0_i32 = arith.constant 0 : i32
    %c0_i32_0 = arith.constant 0 : i32
    %c0_i32_1 = arith.constant 0 : i32
    return %arg0, %c0_i32, %c0_i32_0 : i32, i32, i32
  }
  func.func @transform_2(%arg0: i32) -> (i32, i32, i32) {
    %c0_i32 = arith.constant 0 : i32
    %c0_i32_0 = arith.constant 0 : i32
    %c0_i32_1 = arith.constant 0 : i32
    return %arg0, %c0_i32, %c0_i32_0 : i32, i32, i32
  }
  func.func @transform_3(%arg0: i32) -> (i32, i32, i32) {
    %c0_i32 = arith.constant 0 : i32
    %c0_i32_0 = arith.constant 0 : i32
    %c0_i32_1 = arith.constant 0 : i32
    return %arg0, %c0_i32, %c0_i32_0 : i32, i32, i32
  }
  func.func @transform_4(%arg0: i32) -> (i32, i32, i32) {
    %c0_i32 = arith.constant 0 : i32
    %c0_i32_0 = arith.constant 0 : i32
    %c0_i32_1 = arith.constant 0 : i32
    return %arg0, %c0_i32, %c0_i32_0 : i32, i32, i32
  }
  func.func @transform_5(%arg0: i32) -> (i32, i32, i32) {
    %c0_i32 = arith.constant 0 : i32
    %c0_i32_0 = arith.constant 0 : i32
    %c0_i32_1 = arith.constant 0 : i32
    return %arg0, %c0_i32, %c0_i32_0 : i32, i32, i32
  }
  func.func @transform_6(%arg0: i32) -> (i32, i32, i32) {
    %c0_i32 = arith.constant 0 : i32
    %c0_i32_0 = arith.constant 0 : i32
    %c0_i32_1 = arith.constant 0 : i32
    return %arg0, %c0_i32, %c0_i32_0 : i32, i32, i32
  }
}

</mosaic_0001>

<bundles_post_ra>
// kernel: _qcc_impl.2
= control target key start
LH: loop header
LB: loop body
LE: loop exit
PB: predicated region body
PF: predicated region fallthrough
CT: control target
= control target key end

     0   :  { %vm164_vm0 = vcmask 130048   ;;  %s472_s1 = inlined_call_operand.vmem [shape: f32[256,16], index: 1, kind: input, shape index: {}]   ;;  %s473_s0 = inlined_call_operand.vmem [shape: f32[64,256], index: 0, kind: input, shape index: {}]   ;;  %s474_s2 = inlined_call_operand.vmem [shape: f32[64,16], index: 2, kind: output, shape index: {}]  }
   0x1   :  { %v43_v0 = vld [vmem:[%s472_s1 + $0x80] sm:$0xff]  ;;  %v44_v1 = vld [vmem:[%s472_s1 + $0x88] sm:$0xff]  ;;  %v45_v5 = vld [vmem:[%s472_s1 + $0x90] sm:$0xff] }
   0x2   :  { %v27_v2 = vld [vmem:[%s472_s1] sm:$0xff]  ;;  %v233_v3 = vpack.c.bf16 %v44_v1, %v43_v0  ;;  %v28_v4 = vld [vmem:[%s472_s1 + $0x8] sm:$0xff]  ;;  %v46_v6 = vld [vmem:[%s472_s1 + $0x98] sm:$0xff] }
   0x3   :  { %v235_v7 = vpack.c.bf16 %v28_v4, %v27_v2  ;;  %v237_v8 = vpack.c.bf16 %v46_v6, %v45_v5  ;;  %v29_v9 = vld [vmem:[%s472_s1 + $0x10] sm:$0xff]  ;;  %v30_v10 = vld [vmem:[%s472_s1 + $0x18] sm:$0xff]  ;;  %v47_v11 = vld [vmem:[%s472_s1 + $0xa0] sm:$0xff] }
   0x4   :  { %234 = vmatprep.subr.bf16.mxu0 %v233_v3  ;;  %265 = vmatprep.subr.bf16.mxu1 %v233_v3  ;;  %v48_v12 = vld [vmem:[%s472_s1 + $0xa8] sm:$0xff]  ;;  %v239_v13 = vpack.c.bf16 %v30_v10, %v29_v9  ;;  %v31_v15 = vld [vmem:[%s472_s1 + $0x20] sm:$0xff]  ;;  %v49_v17 = vld [vmem:[%s472_s1 + $0xb0] sm:$0xff] }
   0x5   :  { %236 = vmatpush3.bf16.msra.mxu0 %v235_v7  ;;  %273 = vmatpush3.bf16.msra.mxu1 %v235_v7  ;;  %v241_v14 = vpack.c.bf16 %v48_v12, %v47_v11  ;;  %v32_v16 = vld [vmem:[%s472_s1 + $0x28] sm:$0xff]  ;;  %v50_v18 = vld [vmem:[%s472_s1 + $0xb8] sm:$0xff]  ;;  %v33_v21 = vld [vmem:[%s472_s1 + $0x30] sm:$0xff] }
   0x6   :  { %238 = vmatprep.subr.bf16.mxu0 %v237_v8  ;;  %266 = vmatprep.subr.bf16.mxu1 %v237_v8  ;;  %v243_v19 = vpack.c.bf16 %v32_v16, %v31_v15  ;;  %v245_v20 = vpack.c.bf16 %v50_v18, %v49_v17  ;;  %v34_v22 = vld [vmem:[%s472_s1 + $0x38] sm:$0xff]  ;;  %v51_v23 = vld [vmem:[%s472_s1 + $0xc0] sm:$0xff]  ;;  %v52_v24 = vld [vmem:[%s472_s1 + $0xc8] sm:$0xff] }
   0x7   :  { %v12_v25 = vld [vmem:[%s473_s0 + $0x8] sm:$0xff]  ;;  %v247_v27 = vpack.c.bf16 %v34_v22, %v33_v21  ;;  %v249_v28 = vpack.c.bf16 %v52_v24, %v51_v23  ;;  %v35_v29 = vld [vmem:[%s472_s1 + $0x40] sm:$0xff]  ;;  %v53_v31 = vld [vmem:[%s472_s1 + $0xd0] sm:$0xff] }
   0x8   :  { %123 = vmatprep.mubr.f32.mxu0 %v12_v25  ;;  %v20_v26 = vld [vmem:[%s473_s0 + $0x48] sm:$0xff]  ;;  %v54_v32 = vld [vmem:[%s472_s1 + $0xd8] sm:$0xff]  ;;  %v37_v35 = vld [vmem:[%s472_s1 + $0x50] sm:$0xff] }
   0x9   :  { %240 = vmatpush3.bf16.msra.mxu0 %v239_v13  ;;  %274 = vmatpush3.bf16.msra.mxu1 %v239_v13  ;;  %v36_v30 = vld [vmem:[%s472_s1 + $0x48] sm:$0xff]  ;;  %v253_v34 = vpack.c.bf16 %v54_v32, %v53_v31  ;;  %v38_v36 = vld [vmem:[%s472_s1 + $0x58] sm:$0xff]  ;;  %v55_v37 = vld [vmem:[%s472_s1 + $0xe0] sm:$0xff] }
   0xa   :  { %242 = vmatprep.subr.bf16.mxu0 %v241_v14  ;;  %267 = vmatprep.subr.bf16.mxu1 %v241_v14  ;;  %v251_v33 = vpack.c.bf16 %v36_v30, %v35_v29  ;;  %v56_v38 = vld [vmem:[%s472_s1 + $0xe8] sm:$0xff]  ;;  %v255_v39 = vpack.c.bf16 %v38_v36, %v37_v35  ;;  %v39_v41 = vld [vmem:[%s472_s1 + $0x60] sm:$0xff]  ;;  %v57_v43 = vld [vmem:[%s472_s1 + $0xf0] sm:$0xff] }
   0xb   :  { %143 = vmatprep.mubr.f32.mxu1 %v20_v26  ;;  %v257_v40 = vpack.c.bf16 %v56_v38, %v55_v37  ;;  %v40_v42 = vld [vmem:[%s472_s1 + $0x68] sm:$0xff]  ;;  %v58_v44 = vld [vmem:[%s472_s1 + $0xf8] sm:$0xff]  ;;  %v41_v47 = vld [vmem:[%s472_s1 + $0x70] sm:$0xff] }
   0xc   :  { %v259_v45 = vpack.c.bf16 %v40_v42, %v39_v41  ;;  %v261_v46 = vpack.c.bf16 %v58_v44, %v57_v43  ;;  %v42_v48 = vld [vmem:[%s472_s1 + $0x78] sm:$0xff]  ;;  %v11_v50 = vld [vmem:[%s473_s0] sm:$0xff]  ;;  %v13_v54 = vld [vmem:[%s473_s0 + $0x10] sm:$0xff] }
   0xd   :  { %244 = vmatpush3.bf16.msra.mxu0 %v243_v19  ;;  %275 = vmatpush3.bf16.msra.mxu1 %v243_v19  ;;  %v263_v49 = vpack.c.bf16 %v42_v48, %v41_v47  ;;  %v19_v51 = vld [vmem:[%s473_s0 + $0x40] sm:$0xff]  ;;  %v14_v52 = vld [vmem:[%s473_s0 + $0x18] sm:$0xff]  ;;  %v21_v55 = vld [vmem:[%s473_s0 + $0x50] sm:$0xff] }
   0xe   :  { %246 = vmatprep.subr.bf16.mxu0 %v245_v20  ;;  %268 = vmatprep.subr.bf16.mxu1 %v245_v20  ;;  %v22_v53 = vld [vmem:[%s473_s0 + $0x58] sm:$0xff]  ;;  %v16_v56 = vld [vmem:[%s473_s0 + $0x28] sm:$0xff]  ;;  %v15_v58 = vld [vmem:[%s473_s0 + $0x20] sm:$0xff] }
   0xf   :  { %v24_v57 = vld [vmem:[%s473_s0 + $0x68] sm:$0xff]  ;;  %v23_v59 = vld [vmem:[%s473_s0 + $0x60] sm:$0xff]  ;;  %v18_v60 = vld [vmem:[%s473_s0 + $0x38] sm:$0xff] }
  0x10   :  { %v26_v61 = vld [vmem:[%s473_s0 + $0x78] sm:$0xff]  ;;  %v17_v62 = vld [vmem:[%s473_s0 + $0x30] sm:$0xff] }
  0x11   :  { %248 = vmatpush3.bf16.msra.mxu0 %v247_v27  ;;  %276 = vmatpush3.bf16.msra.mxu1 %v247_v27  ;;  %v25_v63 = vld [vmem:[%s473_s0 + $0x70] sm:$0xff] }
  0x12   :  { %250 = vmatprep.subr.bf16.mxu0 %v249_v28  ;;  %269 = vmatprep.subr.bf16.mxu1 %v249_v28 }
  0x15   :  { %252 = vmatpush3.bf16.msra.mxu0 %v251_v33  ;;  %277 = vmatpush3.bf16.msra.mxu1 %v251_v33 }
  0x16   :  { %254 = vmatprep.subr.bf16.mxu0 %v253_v34  ;;  %270 = vmatprep.subr.bf16.mxu1 %v253_v34 }
  0x19   :  { %256 = vmatpush3.bf16.msra.mxu0 %v255_v39  ;;  %278 = vmatpush3.bf16.msra.mxu1 %v255_v39 }
  0x1a   :  { %258 = vmatprep.subr.bf16.mxu0 %v257_v40  ;;  %271 = vmatprep.subr.bf16.mxu1 %v257_v40 }
  0x1d   :  { %260 = vmatpush3.bf16.msra.mxu0 %v259_v45  ;;  %279 = vmatpush3.bf16.msra.mxu1 %v259_v45 }
  0x1e   :  { %262 = vmatprep.subr.bf16.mxu0 %v261_v46  ;;  %272 = vmatprep.subr.bf16.mxu1 %v261_v46 }
  0x21   :  { %264 = vmatpush3.bf16.msra.mxu0 %v263_v49  ;;  %280 = vmatpush3.bf16.msra.mxu1 %v263_v49 }
  0x24   :  { %124 = vmatmul.mubr.f32.vlgmr.msra.gmra.mrb[0].mxu0 %v11_v50  ;;  %144 = vmatmul.mubr.f32.vlgmr.msra.gmra.mrb[0].mxu1 %v19_v51 }
  0x25   :  { %128 = vmatprep.mubr.f32.mxu0 %v14_v52  ;;  %148 = vmatprep.mubr.f32.mxu1 %v22_v53 }
  0x28   :  { %129 = vmatmul.mubr.f32.gmra.mrb[2].mxu0 %v13_v54  ;;  %149 = vmatmul.mubr.f32.gmra.mrb[2].mxu1 %v21_v55 }
  0x29   :  { %133 = vmatprep.mubr.f32.mxu0 %v16_v56  ;;  %153 = vmatprep.mubr.f32.mxu1 %v24_v57 }
  0x2c   :  { %134 = vmatmul.mubr.f32.gmra.mrb[4].mxu0 %v15_v58  ;;  %154 = vmatmul.mubr.f32.gmra.mrb[4].mxu1 %v23_v59 }
  0x2d   :  { %138 = vmatprep.mubr.f32.mxu0 %v18_v60  ;;  %158 = vmatprep.mubr.f32.mxu1 %v26_v61 }
  0x30   :  { %139 = vmatmul.mubr.f32.gmra.mrb[6].mxu0 %v17_v62  ;;  %159 = vmatmul.mubr.f32.gmra.mrb[6].mxu1 %v25_v63 }
  0xf7   :  { %v209_v0 = vpop.f32.mrb[0].mxu0  ;;  %v221_v1 = vpop.f32.mrb[0].mxu1 }
  0xf8   :  { %v210_v2 = vpop.f32.mrb[1].mxu0  ;;  %v222_v3 = vpop.f32.mrb[1].mxu1 }
  0xf9   :  { %v211_v4 = vadd.f32 %v210_v2, %v209_v0  ;;  %v223_v5 = vadd.f32 %v222_v3, %v221_v1 }
  0xfb   :  { %165 = vst.msk [vmem:[%s474_s2] sm:$0xff] %vm164_vm0, %v211_v4  ;;  %169 = vst.msk [vmem:[%s474_s2 + $0x20] sm:$0xff] %vm164_vm0, %v223_v5  ;;  %v212_v6 = vpop.f32.mrb[2].mxu0  ;;  %v224_v7 = vpop.f32.mrb[2].mxu1 }
  0xfc   :  { %v213_v8 = vpop.f32.mrb[3].mxu0  ;;  %v225_v9 = vpop.f32.mrb[3].mxu1 }
  0xfd   :  { %v214_v10 = vadd.f32 %v213_v8, %v212_v6  ;;  %v226_v11 = vadd.f32 %v225_v9, %v224_v7 }
  0xff   :  { %166 = vst.msk [vmem:[%s474_s2 + $0x8] sm:$0xff] %vm164_vm0, %v214_v10  ;;  %170 = vst.msk [vmem:[%s474_s2 + $0x28] sm:$0xff] %vm164_vm0, %v226_v11  ;;  %v215_v12 = vpop.f32.mrb[4].mxu0  ;;  %v227_v13 = vpop.f32.mrb[4].mxu1 }
 0x100   :  { %v216_v14 = vpop.f32.mrb[5].mxu0  ;;  %v228_v15 = vpop.f32.mrb[5].mxu1 }
 0x101   :  { %v217_v16 = vadd.f32 %v216_v14, %v215_v12  ;;  %v229_v17 = vadd.f32 %v228_v15, %v227_v13 }
 0x103   :  { %167 = vst.msk [vmem:[%s474_s2 + $0x10] sm:$0xff] %vm164_vm0, %v217_v16  ;;  %171 = vst.msk [vmem:[%s474_s2 + $0x30] sm:$0xff] %vm164_vm0, %v229_v17  ;;  %v218_v18 = vpop.f32.mrb[6].mxu0  ;;  %v230_v19 = vpop.f32.mrb[6].mxu1 }
 0x104   :  { %v219_v20 = vpop.f32.mrb[7].mxu0  ;;  %v231_v21 = vpop.f32.mrb[7].mxu1 }
 0x105   :  { %v220_v22 = vadd.f32 %v219_v20, %v218_v18  ;;  %v232_v23 = vadd.f32 %v231_v21, %v230_v19 }
 0x107   :  { %168 = vst.msk [vmem:[%s474_s2 + $0x18] sm:$0xff] %vm164_vm0, %v220_v22  ;;  %172 = vst.msk [vmem:[%s474_s2 + $0x38] sm:$0xff] %vm164_vm0, %v232_v23 }

// kernel: _qcc_impl.3
= control target key start
LH: loop header
LB: loop body
LE: loop exit
PB: predicated region body
PF: predicated region fallthrough
CT: control target
= control target key end

     0   :  { %s2296_s21 = smov 0   ;;  %s3324_s0 = inlined_call_operand.vmem [shape: f32[2,1,1], index: 0, kind: input, shape index: {}]   ;;  %s3325_s1 = inlined_call_operand.vmem [shape: f32[2,128,4], index: 1, kind: input, shape index: {}]   ;;  %s3326_s2 = inlined_call_operand.vmem [shape: f32[2,4,128], index: 2, kind: input, shape index: {}]   ;;  %s3327_s3 = inlined_call_operand.vmem [shape: f32[2,4,3], index: 3, kind: input, shape index: {}]   ;;  %s3328_s4 = inlined_call_operand.vmem [shape: f32[2,1,3], index: 4, kind: output, shape index: {0}]   ;;  %s3329_s5 = inlined_call_operand.vmem [shape: f32[2,1,3], index: 5, kind: output, shape index: {1}]   ;;  %s3330_s6 = inlined_call_operand.vmem [shape: f32[2,4,3], index: 6, kind: output, shape index: {2}]  }
   0x1 LB: > { %s1938_s22 = sadd.s32 4294967295, %s2245_s21   ;;  %p1942_p0 = scmp.ge.s32.totalorder %s2245_s21, 1  ;;  %s2245_s21 = sphi %s2296_s21, %s17_s21  }
   0x2   : > { %p243_p1 = scmp.lt.s32.totalorder %s2245_s21, 3 }
   0x4   : > { %p244_p2 = pnand %p1942_p0, %p243_p1 }
   0x6   : > { %247 = sbr.rel (%p244_p2) target bundleno = 1526 (0x5f6), region = 36 }
   0xd   : > { %p289_p3 = scmp.lt.s32.totalorder %s1938_s22, 1  ;;  %v2255_v0 = vmov 0   ;;  %vm395_vm0 = vcmask 31744   ;;  %s2481_s25 = smov 0  }
   0xe   : > { %2196 = vset.pattern.permute.xlu0 %v2255_v0 }
   0xf   : > { %s3341_s22 = smov (!%p289_p3, %s1938_s22), 1 }
  0x10   : > { %s2001_s23 = sshll.u32 %s3341_s22, 7  ;;  %s2308_s24 = sshll.u32 %s3341_s22, 2 }
  0x11   : > { %s2313_s27 = scalar_lea.vmem %s3325_s1, %s2001_s23  ;;  %s300_s30 = scalar_lea.vmem %s3326_s2, %s2308_s24 }
  0x12   : > { %s304_s9 = scalar_lea.vmem %s3327_s3, %s2308_s24  ;;  %s307_s12 = scalar_lea.vmem %s3328_s4, %s3341_s22  ;;  %v2328_v1 = vld [vmem:[%s2313_s27] sm:$0xff]  ;;  %v2333_v3 = vld [vmem:[%s2313_s27 + $0x8] sm:$0xff]  ;;  %v2350_v7 = vld [vmem:[%s2313_s27 + $0x10] sm:$0xff] }
  0x13   : > { %v2330_v2 = vld [vmem:[%s300_s30] sm:$0xf]  ;;  %s310_s15 = scalar_lea.vmem %s3329_s5, %s3341_s22  ;;  %s314_s18 = scalar_lea.vmem %s3330_s6, %s2308_s24  ;;  %v379_v4 = vmul.f32 %v2328_v1, %v2328_v1  ;;  %v380_v6 = vmul.f32 %v2333_v3, %v2333_v3  ;;  %v381_v9 = vmul.f32 %v2350_v7, %v2350_v7  ;;  %v2358_v10 = vld [vmem:[%s2313_s27 + $0x18] sm:$0xff]  ;;  %v2364_v13 = vld [vmem:[%s2313_s27 + $0x28] sm:$0xff] }
  0x14   : > { %v2345_v5 = vld [vmem:[%s304_s9] sm:$0xf]   ;;  %v382_v12 = vmul.f32 %v2358_v10, %v2358_v10  ;;  %v2371_v17 = vld [vmem:[%s2313_s27 + $0x30] sm:$0xff]  ;;  %v384_v19 = vmul.f32 %v2364_v13, %v2364_v13  ;;  %v2377_v20 = vld [vmem:[%s2313_s27 + $0x38] sm:$0xff]  ;;  %s291_s23 = scalar_lea.vmem %s3324_s0, %s3341_s22 }
  0x15   : > { %v2353_v8 = vld [vmem:[%s2313_s27 + $0x20] sm:$0xff]  ;;  %v396_v11 = vsel %vm395_vm0, %v379_v4, 0.0  ;;  %v402_v14 = vsel %vm395_vm0, %v381_v9, 0.0  ;;  %v399_v15 = vsel %vm395_vm0, %v380_v6, 0.0  ;;  %v385_v22 = vmul.f32 %v2371_v17, %v2371_v17  ;;  %v2389_v26 = vld [vmem:[%s2313_s27 + $0x48] sm:$0xff]  ;;  %v2395_v29 = vld [vmem:[%s2313_s27 + $0x50] sm:$0xff] }
  0x16   : > { %397 = vadd.xlane.f32.xlu0 %v396_v11  ;;  %v383_v16 = vmul.f32 %v2353_v8, %v2353_v8  ;;  %403 = vadd.xlane.f32.xlu1 %v402_v14  ;;  %v405_v18 = vsel %vm395_vm0, %v382_v12, 0.0  ;;  %v2383_v23 = vld [vmem:[%s2313_s27 + $0x40] sm:$0xff]  ;;  %v411_v24 = vsel %vm395_vm0, %v384_v19, 0.0  ;;  %v386_v25 = vmul.f32 %v2377_v20, %v2377_v20  ;;  %v2401_v32 = vld [vmem:[%s2313_s27 + $0x58] sm:$0xff]  ;;  %v2413_v38 = vld [vmem:[%s2313_s27 + $0x68] sm:$0xff] }
  0x17   : > { %v414_v27 = vsel %vm395_vm0, %v385_v22, 0.0  ;;  %v387_v28 = vmul.f32 %v2383_v23, %v2383_v23  ;;  %v388_v31 = vmul.f32 %v2389_v26, %v2389_v26  ;;  %v389_v34 = vmul.f32 %v2395_v29, %v2395_v29  ;;  %v2407_v35 = vld [vmem:[%s2313_s27 + $0x60] sm:$0xff]  ;;  %v2419_v41 = vld [vmem:[%s2313_s27 + $0x70] sm:$0xff]  ;;  %v2425_v44 = vld [vmem:[%s2313_s27 + $0x78] sm:$0xff] }
  0x18   : > { %v408_v21 = vsel %vm395_vm0, %v383_v16, 0.0  ;;  %v417_v30 = vsel %vm395_vm0, %v386_v25, 0.0  ;;  %v390_v37 = vmul.f32 %v2401_v32, %v2401_v32  ;;  %v391_v40 = vmul.f32 %v2407_v35, %v2407_v35  ;;  %v1948_v51 = vld [vmem:[%s291_s23] ss:$0 sm:$0xff] }
  0x19   : > { %v420_v33 = vsel %vm395_vm0, %v387_v28, 0.0  ;;  %v423_v36 = vsel %vm395_vm0, %v388_v31, 0.0  ;;  %v426_v39 = vsel %vm395_vm0, %v389_v34, 0.0  ;;  %v392_v43 = vmul.f32 %v2413_v38, %v2413_v38 }
  0x1a   : > { %400 = vadd.xlane.f32.xlu0 %v399_v15  ;;  %406 = vadd.xlane.f32.xlu1 %v405_v18  ;;  %v429_v42 = vsel %vm395_vm0, %v390_v37, 0.0  ;;  %v432_v45 = vsel %vm395_vm0, %v391_v40, 0.0  ;;  %v393_v46 = vmul.f32 %v2419_v41, %v2419_v41  ;;  %v394_v48 = vmul.f32 %v2425_v44, %v2425_v44 }
  0x1b   : > { %v435_v47 = vsel %vm395_vm0, %v392_v43, 0.0  ;;  %v366_v6 = vlaneseq }
  0x1c   : > { %v438_v49 = vsel %vm395_vm0, %v393_v46, 0.0  ;;  %v441_v50 = vsel %vm395_vm0, %v394_v48, 0.0 }
  0x1d   : > { %v367_v11 = vand.u32 127, %v366_v6 }
  0x1e   : > { %409 = vadd.xlane.f32.xlu0 %v408_v21  ;;  %412 = vadd.xlane.f32.xlu1 %v411_v24 }
  0x1f   : > { %v2471_v14 = vcvt.s32.f32 %v367_v11 }
  0x22   : > { %415 = vadd.xlane.f32.xlu0 %v414_v27  ;;  %418 = vadd.xlane.f32.xlu1 %v417_v30 }
  0x26   : > { %421 = vadd.xlane.f32.xlu0 %v420_v33  ;;  %424 = vadd.xlane.f32.xlu1 %v423_v36 }
  0x2a   : > { %427 = vadd.xlane.f32.xlu0 %v426_v39  ;;  %430 = vadd.xlane.f32.xlu1 %v429_v42 }
  0x2e   : > { %433 = vadd.xlane.f32.xlu0 %v432_v45  ;;  %436 = vadd.xlane.f32.xlu1 %v435_v47 }
  0x32   : > { %439 = vadd.xlane.f32.xlu0 %v438_v49  ;;  %442 = vadd.xlane.f32.xlu1 %v441_v50 }
  0x48   : > { %375 = vperm.xlu0 %2196, %v1948_v51  }
  0xa3   : > { %v2439_v52 = vpop.xlane.xlu0 %397  ;;  %v2441_v53 = vpop.xlane.xlu1 %403 }
  0xa7   : > { %v2443_v54 = vpop.xlane.xlu0 %400  ;;  %v2445_v55 = vpop.xlane.xlu1 %406 }
  0xab   : > { %v2447_v56 = vpop.xlane.xlu0 %409  ;;  %v2449_v57 = vpop.xlane.xlu1 %412 }
  0xaf   : > { %v2451_v58 = vpop.xlane.xlu0 %415  ;;  %v2453_v59 = vpop.xlane.xlu1 %418 }
  0xb3   : > { %v2455_v60 = vpop.xlane.xlu0 %421  ;;  %v2457_v61 = vpop.xlane.xlu1 %424 }
  0xb7   : > { %v2459_v62 = vpop.xlane.xlu0 %427  ;;  %v2461_v63 = vpop.xlane.xlu1 %430 }
  0xbb   : > { %v2463_v0 = vpop.xlane.xlu0 %433  ;;  %v2465_v4 = vpop.xlane.xlu1 %436 }
  0xbc   : > { %3331 = vst [vmem:[#allocation2_spill] sm:$0xff] %v2465_v4 }
  0xbf   : > { %v2467_v9 = vpop.xlane.xlu0 %439  ;;  %v2469_v12 = vpop.xlane.xlu1 %442 }
  0xc0   : > { %3332 = vst [vmem:[#allocation3_spill] sm:$0xff] %v2469_v12 }
  0xc7   : > { %v376_v15 = vpop.permute.xlu0 %375 }
  0xc8   : > { %vm2474_vm1 = vcmp.lt.f32.partialorder %v2471_v14, %v376_v15 }
  0xc9 LB: >> { %vm500_vm2 = vcmask 1043456   ;;  %2055 = vmatprep.mubr.msk.f32.mxu0 %vm395_vm0, %v2328_v1  ;;  %v649_v18 = vmul.f32 %v2249_v5, %v2249_v5  ;;  %vm650_vm3 = vcmask 19456   ;;  %vm738_vm4 = vcmask 23552   ;;  %v3335_v4 = vld [vmem:[#allocation2_spill] sm:$0xff]  ;;  %v3336_v12 = vld [vmem:[#allocation3_spill] sm:$0xff]  ;;  %s450_s25 = sadd.s32 1, %s2253_s25   ;;  %s2253_s25 = sphi %s2481_s25, %s450_s25   ;;  %v2249_v5 = vphi %v2345_v5, %v3337_v5  }
  0xca   : >> { %2053 = vmatprep.subr.msk.mxu0 %vm500_vm2, %v2249_v5  ;;  %p447_p4 = scmp.ge.s32.totalorder %s450_s25, 25  }
  0xcb   : >> { %2054 = vmatpush3.msk.msra.mxu0 %vm500_vm2, %v2249_v5  ;;  %v651_v19 = vsel %vm650_vm3, %v649_v18, 0.0 }
  0xcc   : >> { %2056 = vmatmul.mubr.msk.f32.vlgmr.msra.gmra.mrb[0].mxu0 %vm395_vm0, %v2333_v3  ;;  %v652_v21 = vrot.slane %v651_v19, 4 }
  0xcd   : >> { %2058 = vmatprep.mubr.msk.f32.mxu0 %vm395_vm0, %v2350_v7 }
  0xce   : >> { %v653_v22 = vadd.f32 %v652_v21, %v651_v19 }
  0xd0   : >> { %2059 = vmatmul.mubr.msk.f32.gmra.mrb[2].mxu0 %vm395_vm0, %v2358_v10  ;;  %v654_v24 = vrot.slane %v653_v22, 2 }
  0xd1   : >> { %2061 = vmatprep.mubr.msk.f32.mxu0 %vm395_vm0, %v2353_v8 }
  0xd2   : >> { %v655_v25 = vadd.f32 %v654_v24, %v653_v22 }
  0xd4   : >> { %2062 = vmatmul.mubr.msk.f32.gmra.mrb[4].mxu0 %vm395_vm0, %v2364_v13  ;;  %v656_v27 = vrot.slane %v655_v25, 1 }
  0xd5   : >> { %2064 = vmatprep.mubr.msk.f32.mxu0 %vm395_vm0, %v2371_v17 }
  0xd6   : >> { %v2528_v28 = vadd.f32 %v656_v27, %v655_v25 }
  0xd8   : >> { %2065 = vmatmul.mubr.msk.f32.gmra.mrb[6].mxu0 %vm395_vm0, %v2377_v20  ;;  %v659_v30 = vadd.f32 %v2528_v28, %v2443_v54  ;;  %v658_v33 = vadd.f32 %v2528_v28, %v2439_v52  ;;  %v661_v39 = vadd.f32 %v2528_v28, %v2445_v55  ;;  %v660_v45 = vadd.f32 %v2528_v28, %v2441_v53 }
  0xd9   : >> { %2067 = vmatprep.mubr.msk.f32.mxu0 %vm395_vm0, %v2383_v23  ;;  %v663_v6 = vadd.f32 %v2528_v28, %v2449_v57  ;;  %v662_v19 = vadd.f32 %v2528_v28, %v2447_v56 }
  0xdc   : >> { %2068 = vmatmul.mubr.msk.f32.gmra.mrb[8].mxu0 %vm395_vm0, %v2389_v26 }
  0xdd   : >> { %2070 = vmatprep.mubr.msk.f32.mxu0 %vm395_vm0, %v2395_v29 }
  0xe0   : >> { %2071 = vmatmul.mubr.msk.f32.gmra.mrb[10].mxu0 %vm395_vm0, %v2401_v32 }
  0xe1   : >> { %2073 = vmatprep.mubr.msk.f32.mxu0 %vm395_vm0, %v2407_v35 }
  0xe4   : >> { %2074 = vmatmul.mubr.msk.f32.gmra.mrb[12].mxu0 %vm395_vm0, %v2413_v38 }
  0xe5   : >> { %2076 = vmatprep.mubr.msk.f32.mxu0 %vm395_vm0, %v2419_v41 }
  0xe8   : >> { %2077 = vmatmul.mubr.msk.f32.gmra.mrb[14].mxu0 %vm395_vm0, %v2425_v44 }
  0xe9   : > { %2116 = vmatprep.mubr.msk.f32.mxu0 (%p447_p4), %vm395_vm0, %v2328_v1 }
 0x19f   : >> { %v2057_v31 = vpop.f32.mrb[0].mxu0 }
 0x1a0   : >> { %v675_v34 = vmul.f32 2.0, %v2057_v31  ;;  %v570_v36 = vpop.f32.mrb[1].mxu0 }
 0x1a1   : >> { %v674_v37 = vmul.f32 2.0, %v570_v36  ;;  %v665_v36 = vadd.f32 %v2528_v28, %v2453_v59 }
 0x1a2   : >> { %v691_v40 = vsub.f32 %v659_v30, %v675_v34 }
 0x1a3   : >> { %v2060_v42 = vpop.f32.mrb[2].mxu0  ;;  %v690_v43 = vsub.f32 %v658_v33, %v674_v37 }
 0x1a4   : >> { %v677_v46 = vmul.f32 2.0, %v2060_v42  ;;  %v580_v47 = vpop.f32.mrb[3].mxu0  ;;  %v707_v50 = vmax.f32 %v691_v40, 0.0  ;;  %v664_v42 = vadd.f32 %v2528_v28, %v2451_v58 }
 0x1a5   : >> { %v676_v48 = vmul.f32 2.0, %v580_v47  ;;  %v706_v49 = vmax.f32 %v690_v43, 0.0 }
 0x1a6   : >> { %v693_v51 = vsub.f32 %v661_v39, %v677_v46  ;;  %v2550_v30 = vsel %vm2474_vm1, %v707_v50, 1e+30 }
 0x1a7   : >> { %v2063_v11 = vpop.f32.mrb[4].mxu0  ;;  %v2542_v15 = vsel %vm2474_vm1, %v706_v49, 1e+30  ;;  %v692_v18 = vsub.f32 %v660_v45, %v676_v48  ;;  %v742_v46 = vsel %vm738_vm4, %v2550_v30, inf }
 0x1a8   : >> { %v679_v21 = vmul.f32 2.0, %v2063_v11  ;;  %v590_v22 = vpop.f32.mrb[5].mxu0  ;;  %v739_v24 = vsel %vm738_vm4, %v2542_v15, inf  ;;  %v709_v25 = vmax.f32 %v693_v51, 0.0  ;;  %v667_v11 = vadd.f32 %v2528_v28, %v2457_v61 }
 0x1a9   : >> { %v678_v27 = vmul.f32 2.0, %v590_v22  ;;  %740 = vmin.xlane.f32.xlu0 %v739_v24  ;;  %v708_v31 = vmax.f32 %v692_v18, 0.0  ;;  %v666_v24 = vadd.f32 %v2528_v28, %v2455_v60 }
 0x1aa   : >> { %v2554_v33 = vsel %vm2474_vm1, %v709_v25, 1e+30  ;;  %v695_v34 = vsub.f32 %v663_v6, %v679_v21 }
 0x1ab   : >> { %v2066_v37 = vpop.f32.mrb[6].mxu0  ;;  %v748_v39 = vsel %vm738_vm4, %v2554_v33, inf  ;;  %v694_v40 = vsub.f32 %v662_v19, %v678_v27  ;;  %v2566_v47 = vsel %vm2474_vm1, %v708_v31, 1e+30 }
 0x1ac   : >> { %v681_v43 = vmul.f32 2.0, %v2066_v37  ;;  %749 = vmin.xlane.f32.xlu1 %v748_v39  ;;  %v600_v45 = vpop.f32.mrb[7].mxu0  ;;  %v711_v48 = vmax.f32 %v695_v34, 0.0  ;;  %v745_v19 = vsel %vm738_vm4, %v2566_v47, inf }
 0x1ad   : >> { %v680_v49 = vmul.f32 2.0, %v600_v45  ;;  %743 = vmin.xlane.f32.xlu0 %v742_v46  ;;  %v710_v50 = vmax.f32 %v694_v40, 0.0 }
 0x1ae   : >> { %v2570_v51 = vsel %vm2474_vm1, %v711_v48, 1e+30  ;;  %v697_v6 = vsub.f32 %v665_v36, %v681_v43  ;;  %v669_v43 = vadd.f32 %v2528_v28, %v2461_v63 }
 0x1af   : >> { %v2069_v18 = vpop.f32.mrb[8].mxu0  ;;  %v2578_v21 = vsel %vm2474_vm1, %v710_v50, 1e+30  ;;  %v696_v22 = vsub.f32 %v664_v42, %v680_v49  ;;  %v754_v37 = vsel %vm738_vm4, %v2570_v51, inf  ;;  %v668_v49 = vadd.f32 %v2528_v28, %v2459_v62 }
 0x1b0   : >> { %v683_v25 = vmul.f32 2.0, %v2069_v18  ;;  %746 = vmin.xlane.f32.xlu1 %v745_v19  ;;  %v610_v27 = vpop.f32.mrb[9].mxu0  ;;  %v751_v31 = vsel %vm738_vm4, %v2578_v21, inf  ;;  %v713_v34 = vmax.f32 %v697_v6, 0.0 }
 0x1b1   : >> { %v682_v36 = vmul.f32 2.0, %v610_v27  ;;  %752 = vmin.xlane.f32.xlu0 %v751_v31  ;;  %v712_v39 = vmax.f32 %v696_v22, 0.0  ;;  %v671_v31 = vadd.f32 %v2528_v28, %v3335_v4 }
 0x1b2   : >> { %v2588_v40 = vsel %vm2474_vm1, %v713_v34, 1e+30  ;;  %v699_v42 = vsub.f32 %v667_v11, %v683_v25 }
 0x1b3   : >> { %v2072_v45 = vpop.f32.mrb[10].mxu0  ;;  %v2594_v46 = vsel %vm2474_vm1, %v712_v39, 1e+30  ;;  %v698_v48 = vsub.f32 %v666_v24, %v682_v36  ;;  %v760_v22 = vsel %vm738_vm4, %v2588_v40, inf  ;;  %v670_v39 = vadd.f32 %v2528_v28, %v2463_v0 }
 0x1b4   : >> { %v685_v50 = vmul.f32 2.0, %v2072_v45  ;;  %755 = vmin.xlane.f32.xlu1 %v754_v37  ;;  %v620_v6 = vpop.f32.mrb[11].mxu0  ;;  %v757_v18 = vsel %vm738_vm4, %v2594_v46, inf  ;;  %v715_v19 = vmax.f32 %v699_v42, 0.0 }
 0x1b5   : >> { %v684_v11 = vmul.f32 2.0, %v620_v6  ;;  %758 = vmin.xlane.f32.xlu0 %v757_v18  ;;  %v714_v25 = vmax.f32 %v698_v48, 0.0 }
 0x1b6   : >> { %v2604_v27 = vsel %vm2474_vm1, %v715_v19, 1e+30  ;;  %v701_v24 = vsub.f32 %v669_v43, %v685_v50 }
 0x1b7   : >> { %v2075_v34 = vpop.f32.mrb[12].mxu0  ;;  %v2610_v36 = vsel %vm2474_vm1, %v714_v25, 1e+30  ;;  %v700_v37 = vsub.f32 %v668_v49, %v684_v11  ;;  %v766_v50 = vsel %vm738_vm4, %v2604_v27, inf  ;;  %v673_v11 = vadd.f32 %v2528_v28, %v3336_v12 }
 0x1b8   : >> { %v687_v42 = vmul.f32 2.0, %v2075_v34  ;;  %761 = vmin.xlane.f32.xlu1 %v760_v22  ;;  %v630_v45 = vpop.f32.mrb[13].mxu0  ;;  %v763_v48 = vsel %vm738_vm4, %v2610_v36, inf  ;;  %v717_v6 = vmax.f32 %v701_v24, 0.0  ;;  %v672_v25 = vadd.f32 %v2528_v28, %v2467_v9 }
 0x1b9   : >> { %v686_v43 = vmul.f32 2.0, %v630_v45  ;;  %764 = vmin.xlane.f32.xlu0 %v763_v48  ;;  %v716_v18 = vmax.f32 %v700_v37, 0.0 }
 0x1ba   : >> { %v2620_v19 = vsel %vm2474_vm1, %v717_v6, 1e+30  ;;  %v703_v49 = vsub.f32 %v671_v31, %v687_v42 }
 0x1bb   : >> { %v2078_v22 = vpop.f32.mrb[14].mxu0  ;;  %v2628_v24 = vsel %vm2474_vm1, %v716_v18, 1e+30  ;;  %v702_v34 = vsub.f32 %v670_v39, %v686_v43  ;;  %v772_v42 = vsel %vm738_vm4, %v2620_v19, inf }
 0x1bc   : >> { %v689_v45 = vmul.f32 2.0, %v2078_v22  ;;  %767 = vmin.xlane.f32.xlu1 %v766_v50  ;;  %v640_v37 = vpop.f32.mrb[15].mxu0  ;;  %v769_v48 = vsel %vm738_vm4, %v2628_v24, inf  ;;  %v719_v6 = vmax.f32 %v703_v49, 0.0 }
 0x1bd   : >> { %v688_v31 = vmul.f32 2.0, %v640_v37  ;;  %770 = vmin.xlane.f32.xlu0 %v769_v48  ;;  %v718_v12 = vmax.f32 %v702_v34, 0.0 }
 0x1be   : >> { %v2636_v28 = vsel %vm2474_vm1, %v719_v6, 1e+30  ;;  %v705_v18 = vsub.f32 %v673_v11, %v689_v45 }
 0x1bf   : >> { %v704_v4 = vsub.f32 %v672_v25, %v688_v31  ;;  %v2640_v39 = vsel %vm2474_vm1, %v718_v12, 1e+30  ;;  %v778_v49 = vsel %vm738_vm4, %v2636_v28, inf }
 0x1c0   : >> { %773 = vmin.xlane.f32.xlu1 %v772_v42  ;;  %v775_v43 = vsel %vm738_vm4, %v2640_v39, inf  ;;  %v721_v50 = vmax.f32 %v705_v18, 0.0 }
 0x1c1   : >> { %776 = vmin.xlane.f32.xlu0 %v775_v43  ;;  %v720_v22 = vmax.f32 %v704_v4, 0.0 }
 0x1c2   : >> { %v2648_v34 = vsel %vm2474_vm1, %v721_v50, 1e+30 }
 0x1c3   : >> { %v2652_v11 = vsel %vm2474_vm1, %v720_v22, 1e+30  ;;  %v784_v25 = vsel %vm738_vm4, %v2648_v34, inf }
 0x1c4   : >> { %779 = vmin.xlane.f32.xlu1 %v778_v49  ;;  %v781_v12 = vsel %vm738_vm4, %v2652_v11, inf }
 0x1c5   : >> { %782 = vmin.xlane.f32.xlu0 %v781_v12 }
 0x1c8   : >> { %785 = vmin.xlane.f32.xlu1 %v784_v25 }
 0x236   : >> { %v741_v45 = vpop.xlane.xlu0 %740 }
 0x237   : >> { %vm787_vm5 = vcmp.le.f32.partialorder %v2542_v15, %v741_v45 }
 0x238   : >> { %v803_v4 = vsel %vm787_vm5, %v2471_v14, 3.0 }
 0x239   : >> { %v750_v37 = vpop.xlane.xlu1 %749  ;;  %v819_v48 = vsel %vm738_vm4, %v803_v4, inf }
 0x23a   : >> { %v744_v6 = vpop.xlane.xlu0 %743  ;;  %820 = vmin.xlane.f32.xlu0 %v819_v48  ;;  %vm790_vm6 = vcmp.le.f32.partialorder %v2554_v33, %v750_v37 }
 0x23b   : >> { %vm788_vm7 = vcmp.le.f32.partialorder %v2550_v30, %v744_v6  ;;  %v806_v43 = vsel %vm790_vm6, %v2471_v14, 3.0 }
 0x23c   : >> { %v804_v31 = vsel %vm788_vm7, %v2471_v14, 3.0  ;;  %v828_v22 = vsel %vm738_vm4, %v806_v43, inf }
 0x23d   : >> { %v747_v42 = vpop.xlane.xlu1 %746  ;;  %v822_v18 = vsel %vm738_vm4, %v804_v31, inf }
 0x23e   : >> { %vm789_vm8 = vcmp.le.f32.partialorder %v2566_v47, %v747_v42  ;;  %v753_v15 = vpop.xlane.xlu0 %752  ;;  %823 = vmin.xlane.f32.xlu1 %v822_v18 }
 0x23f   : >> { %v805_v50 = vsel %vm789_vm8, %v2471_v14, 3.0  ;;  %vm791_vm9 = vcmp.le.f32.partialorder %v2578_v21, %v753_v15 }
 0x240   : >> { %v825_v49 = vsel %vm738_vm4, %v805_v50, inf  ;;  %v807_v33 = vsel %vm791_vm9, %v2471_v14, 3.0  ;;  %v2256_v50 = vmov 0.0|0.0  }
 0x241   : >> { %v756_v30 = vpop.xlane.xlu1 %755  ;;  %826 = vmin.xlane.f32.xlu0 %v825_v49  ;;  %v831_v25 = vsel %vm738_vm4, %v807_v33, inf  ;;  %2140 = vmatprep.subr.bf16.mxu1 %v2256_v50 }
 0x242   : >> { %vm792_vm10 = vcmp.le.f32.partialorder %v2570_v51, %v756_v30  ;;  %v759_v12 = vpop.xlane.xlu0 %758  ;;  %829 = vmin.xlane.f32.xlu1 %v828_v22 }
 0x243   : >> { %v808_v47 = vsel %vm792_vm10, %v2471_v14, 3.0  ;;  %vm793_vm11 = vcmp.le.f32.partialorder %v2594_v46, %v759_v12  ;;  %vm2257_vm10 = vmmov 0  }
 0x244   : >> { %v834_v21 = vsel %vm738_vm4, %v808_v47, inf  ;;  %v809_v45 = vsel %vm793_vm11, %v2471_v14, 3.0 }
 0x245   : >> { %v762_v4 = vpop.xlane.xlu1 %761  ;;  %832 = vmin.xlane.f32.xlu0 %v831_v25  ;;  %v837_v48 = vsel %vm738_vm4, %v809_v45, inf }
 0x246   : >> { %vm794_vm12 = vcmp.le.f32.partialorder %v2588_v40, %v762_v4  ;;  %v765_v37 = vpop.xlane.xlu0 %764  ;;  %835 = vmin.xlane.f32.xlu1 %v834_v21 }
 0x247   : >> { %v810_v51 = vsel %vm794_vm12, %v2471_v14, 3.0  ;;  %vm795_vm13 = vcmp.le.f32.partialorder %v2610_v36, %v765_v37 }
 0x248   : >> { %v840_v46 = vsel %vm738_vm4, %v810_v51, inf  ;;  %v811_v6 = vsel %vm795_vm13, %v2471_v14, 3.0 }
 0x249   : >> { %v768_v31 = vpop.xlane.xlu1 %767  ;;  %838 = vmin.xlane.f32.xlu0 %v837_v48  ;;  %v843_v18 = vsel %vm738_vm4, %v811_v6, inf }
 0x24a   : >> { %vm796_vm14 = vcmp.le.f32.partialorder %v2604_v27, %v768_v31  ;;  %v771_v42 = vpop.xlane.xlu0 %770  ;;  %841 = vmin.xlane.f32.xlu1 %v840_v46  ;;  %v2259_v31 = vmov 1.0|1.0  }
 0x24b   : >> { %v812_v40 = vsel %vm796_vm14, %v2471_v14, 3.0  ;;  %vm797_vm15 = vcmp.le.f32.partialorder %v2628_v24, %v771_v42 }
 0x24c   : >> { %v846_v36 = vsel %vm738_vm4, %v812_v40, inf  ;;  %v813_v43 = vsel %vm797_vm15, %v2471_v14, 3.0 }
 0x24d   : >> { %v774_v15 = vpop.xlane.xlu1 %773  ;;  %844 = vmin.xlane.f32.xlu0 %v843_v18  ;;  %v849_v24 = vsel %vm738_vm4, %v813_v43, inf }
 0x24e   : >> { %vm798_vm5 = vcmp.le.f32.partialorder %v2620_v19, %v774_v15  ;;  %v777_v27 = vpop.xlane.xlu0 %776  ;;  %847 = vmin.xlane.f32.xlu1 %v846_v36 }
 0x24f   : >> { %v814_v49 = vsel %vm798_vm5, %v2471_v14, 3.0  ;;  %vm799_vm6 = vcmp.le.f32.partialorder %v2640_v39, %v777_v27 }
 0x250   : >> { %v852_v33 = vsel %vm738_vm4, %v814_v49, inf  ;;  %v815_v30 = vsel %vm799_vm6, %v2471_v14, 3.0 }
 0x251   : >> { %v780_v22 = vpop.xlane.xlu1 %779  ;;  %850 = vmin.xlane.f32.xlu0 %v849_v24  ;;  %v855_v47 = vsel %vm738_vm4, %v815_v30, inf }
 0x252   : >> { %vm800_vm7 = vcmp.le.f32.partialorder %v2636_v28, %v780_v22  ;;  %853 = vmin.xlane.f32.xlu1 %v852_v33  ;;  %v783_v12 = vpop.xlane.xlu0 %782 }
 0x253   : >> { %v816_v19 = vsel %vm800_vm7, %v2471_v14, 3.0  ;;  %vm801_vm8 = vcmp.le.f32.partialorder %v2652_v11, %v783_v12  ;;  %v2258_v11 = vmov 0.0  }
 0x254   : >> { %v858_v39 = vsel %vm738_vm4, %v816_v19, inf  ;;  %v817_v25 = vsel %vm801_vm8, %v2471_v14, 3.0  ;;  %2111 = vmatprep.mubr.msk.f32.mxu1 %vm2257_vm10, %v2258_v11 }
 0x255   : >> { %v786_v21 = vpop.xlane.xlu1 %785  ;;  %856 = vmin.xlane.f32.xlu0 %v855_v47  ;;  %v861_v28 = vsel %vm738_vm4, %v817_v25, inf }
 0x256   : >> { %vm802_vm9 = vcmp.le.f32.partialorder %v2648_v34, %v786_v21  ;;  %859 = vmin.xlane.f32.xlu1 %v858_v39 }
 0x257   : >> { %v818_v45 = vsel %vm802_vm9, %v2471_v14, 3.0 }
 0x258   : >> { %v864_v4 = vsel %vm738_vm4, %v818_v45, inf }
 0x259   : >> { %862 = vmin.xlane.f32.xlu0 %v861_v28 }
 0x25a   : >> { %865 = vmin.xlane.f32.xlu1 %v864_v4 }
 0x2c7   : >> { %v821_v37 = vpop.xlane.xlu0 %820 }
 0x2c8   : >> { %vm867_vm11 = vcmp.eq.f32.partialorder %v2471_v14, %v821_v37 }
 0x2c9   : >> { %v931_v51 = vsel %vm867_vm11, 1.0, %v2258_v11 }
 0x2ca   : >> { %v947_v46 = vsel %vm738_vm4, %v931_v51, 0.0 }
 0x2cb   : >> { %v824_v48 = vpop.xlane.xlu1 %823 }
 0x2cc   : >> { %vm868_vm12 = vcmp.eq.f32.partialorder %v2471_v14, %v824_v48 }
 0x2cd   : >> { %v932_v34 = vsel %vm868_vm12, 1.0, %v2258_v11  ;;  %vm2141_vm13 = vmpackc.low %vm868_vm12, %vm867_vm11 }
 0x2ce   : >> { %v948_v6 = vsel %vm738_vm4, %v932_v34, 0.0  ;;  %2142 = vmatpush3.bf16.msk.msra.mxu1 %vm2141_vm13, %v2259_v31  ;;  %v827_v42 = vpop.xlane.xlu0 %826 }
 0x2cf   : >> { %v949_v40 = vadd.f32 %v948_v6, %v947_v46  ;;  %vm869_vm14 = vcmp.eq.f32.partialorder %v2471_v14, %v827_v42  ;;  %v830_v18 = vpop.xlane.xlu1 %829  ;;  %2143 = vmatprep.subr.bf16.mxu1 %v2256_v50 }
 0x2d0   : >> { %v933_v36 = vsel %vm869_vm14, 1.0, %v2258_v11  ;;  %vm870_vm15 = vcmp.eq.f32.partialorder %v2471_v14, %v830_v18 }
 0x2d1   : >> { %v950_v43 = vsel %vm738_vm4, %v933_v36, 0.0  ;;  %v934_v15 = vsel %vm870_vm15, 1.0, %v2258_v11  ;;  %vm2144_vm5 = vmpackc.low %vm870_vm15, %vm869_vm14 }
 0x2d2   : >> { %v951_v27 = vadd.f32 %v950_v43, %v949_v40  ;;  %v952_v49 = vsel %vm738_vm4, %v934_v15, 0.0  ;;  %2145 = vmatpush3.bf16.msk.msra.mxu1 %vm2144_vm5, %v2259_v31  ;;  %v833_v24 = vpop.xlane.xlu0 %832 }
 0x2d3   : >> { %vm871_vm6 = vcmp.eq.f32.partialorder %v2471_v14, %v833_v24  ;;  %v836_v33 = vpop.xlane.xlu1 %835  ;;  %2146 = vmatprep.subr.bf16.mxu1 %v2256_v50 }
 0x2d4   : >> { %v953_v30 = vadd.f32 %v952_v49, %v951_v27  ;;  %v935_v22 = vsel %vm871_vm6, 1.0, %v2258_v11  ;;  %vm872_vm7 = vcmp.eq.f32.partialorder %v2471_v14, %v836_v33 }
 0x2d5   : >> { %v954_v12 = vsel %vm738_vm4, %v935_v22, 0.0  ;;  %v936_v19 = vsel %vm872_vm7, 1.0, %v2258_v11  ;;  %vm2147_vm8 = vmpackc.low %vm872_vm7, %vm871_vm6 }
 0x2d6   : >> { %v955_v47 = vadd.f32 %v954_v12, %v953_v30  ;;  %v956_v39 = vsel %vm738_vm4, %v936_v19, 0.0  ;;  %2148 = vmatpush3.bf16.msk.msra.mxu1 %vm2147_vm8, %v2259_v31  ;;  %v839_v25 = vpop.xlane.xlu0 %838 }
 0x2d7   : >> { %vm873_vm9 = vcmp.eq.f32.partialorder %v2471_v14, %v839_v25  ;;  %v842_v21 = vpop.xlane.xlu1 %841  ;;  %2149 = vmatprep.subr.bf16.mxu1 %v2256_v50 }
 0x2d8   : >> { %v957_v45 = vadd.f32 %v956_v39, %v955_v47  ;;  %v937_v28 = vsel %vm873_vm9, 1.0, %v2258_v11  ;;  %vm874_vm10 = vcmp.eq.f32.partialorder %v2471_v14, %v842_v21 }
 0x2d9   : >> { %v958_v4 = vsel %vm738_vm4, %v937_v28, 0.0  ;;  %v938_v37 = vsel %vm874_vm10, 1.0, %v2258_v11  ;;  %vm2150_vm11 = vmpackc.low %vm874_vm10, %vm873_vm9 }
 0x2da   : >> { %v959_v51 = vadd.f32 %v958_v4, %v957_v45  ;;  %v960_v48 = vsel %vm738_vm4, %v938_v37, 0.0  ;;  %2151 = vmatpush3.bf16.msk.msra.mxu1 %vm2150_vm11, %v2259_v31  ;;  %v845_v34 = vpop.xlane.xlu0 %844 }
 0x2db   : >> { %vm875_vm12 = vcmp.eq.f32.partialorder %v2471_v14, %v845_v34  ;;  %v848_v46 = vpop.xlane.xlu1 %847  ;;  %2152 = vmatprep.subr.bf16.mxu1 %v2256_v50 }
 0x2dc   : >> { %v961_v6 = vadd.f32 %v960_v48, %v959_v51  ;;  %v939_v42 = vsel %vm875_vm12, 1.0, %v2258_v11  ;;  %vm876_vm13 = vcmp.eq.f32.partialorder %v2471_v14, %v848_v46 }
 0x2dd   : >> { %v962_v40 = vsel %vm738_vm4, %v939_v42, 0.0  ;;  %v940_v18 = vsel %vm876_vm13, 1.0, %v2258_v11  ;;  %vm2153_vm14 = vmpackc.low %vm876_vm13, %vm875_vm12 }
 0x2de   : >> { %v963_v36 = vadd.f32 %v962_v40, %v961_v6  ;;  %v964_v43 = vsel %vm738_vm4, %v940_v18, 0.0  ;;  %2154 = vmatpush3.bf16.msk.msra.mxu1 %vm2153_vm14, %v2259_v31  ;;  %v851_v15 = vpop.xlane.xlu0 %850 }
 0x2df   : >> { %vm877_vm15 = vcmp.eq.f32.partialorder %v2471_v14, %v851_v15  ;;  %v854_v27 = vpop.xlane.xlu1 %853  ;;  %2155 = vmatprep.subr.bf16.mxu1 %v2256_v50 }
 0x2e0   : >> { %v965_v49 = vadd.f32 %v964_v43, %v963_v36  ;;  %v941_v24 = vsel %vm877_vm15, 1.0, %v2258_v11  ;;  %vm878_vm5 = vcmp.eq.f32.partialorder %v2471_v14, %v854_v27 }
 0x2e1   : >> { %v966_v33 = vsel %vm738_vm4, %v941_v24, 0.0  ;;  %v942_v30 = vsel %vm878_vm5, 1.0, %v2258_v11  ;;  %vm2156_vm6 = vmpackc.low %vm878_vm5, %vm877_vm15 }
 0x2e2   : >> { %v967_v22 = vadd.f32 %v966_v33, %v965_v49  ;;  %v968_v12 = vsel %vm738_vm4, %v942_v30, 0.0  ;;  %2157 = vmatpush3.bf16.msk.msra.mxu1 %vm2156_vm6, %v2259_v31  ;;  %v857_v19 = vpop.xlane.xlu0 %856 }
 0x2e3   : >> { %vm879_vm7 = vcmp.eq.f32.partialorder %v2471_v14, %v857_v19  ;;  %v860_v47 = vpop.xlane.xlu1 %859  ;;  %2158 = vmatprep.subr.bf16.mxu1 %v2256_v50 }
 0x2e4   : >> { %v969_v39 = vadd.f32 %v968_v12, %v967_v22  ;;  %v943_v25 = vsel %vm879_vm7, 1.0, %v2258_v11  ;;  %vm880_vm8 = vcmp.eq.f32.partialorder %v2471_v14, %v860_v47 }
 0x2e5   : >> { %v970_v21 = vsel %vm738_vm4, %v943_v25, 0.0  ;;  %v944_v45 = vsel %vm880_vm8, 1.0, %v2258_v11  ;;  %vm2159_vm9 = vmpackc.low %vm880_vm8, %vm879_vm7 }
 0x2e6   : >> { %v971_v28 = vadd.f32 %v970_v21, %v969_v39  ;;  %v972_v4 = vsel %vm738_vm4, %v944_v45, 0.0  ;;  %2160 = vmatpush3.bf16.msk.msra.mxu1 %vm2159_vm9, %v2259_v31  ;;  %v863_v37 = vpop.xlane.xlu0 %862 }
 0x2e7   : >> { %vm881_vm10 = vcmp.eq.f32.partialorder %v2471_v14, %v863_v37  ;;  %v866_v51 = vpop.xlane.xlu1 %865  ;;  %2161 = vmatprep.subr.bf16.mxu1 %v2256_v50 }
 0x2e8   : >> { %v973_v48 = vadd.f32 %v972_v4, %v971_v28  ;;  %v945_v34 = vsel %vm881_vm10, 1.0, %v2258_v11  ;;  %vm882_vm11 = vcmp.eq.f32.partialorder %v2471_v14, %v866_v51 }
 0x2e9   : >> { %v974_v46 = vsel %vm738_vm4, %v945_v34, 0.0  ;;  %v946_v6 = vsel %vm882_vm11, 1.0, %v2258_v11  ;;  %vm2162_vm12 = vmpackc.low %vm882_vm11, %vm881_vm10 }
 0x2ea   : >> { %v975_v42 = vadd.f32 %v974_v46, %v973_v48  ;;  %v976_v40 = vsel %vm738_vm4, %v946_v6, 0.0  ;;  %2163 = vmatpush3.bf16.msk.msra.mxu1 %vm2162_vm12, %v2259_v31 }
 0x2ec   : >> { %v977_v18 = vadd.f32 %v976_v40, %v975_v42 }
 0x2ed   : >> { %2112 = vmatmul.mubr.f32.vlgmr.msra.gmra.mrb[0].mxu1 %v2330_v2 }
 0x2ee   : >> { %v978_v36 = vrot.slane %v977_v18, 4  ;;  %2128 = vmatprep.mubr.msk.f32.mxu1 (%p447_p4), %vm395_vm0, %v2383_v23 }
 0x2f0   : >> { %v979_v50 = vadd.f32 %v978_v36, %v977_v18 }
 0x2f2   : >> { %v980_v43 = vrot.slane %v979_v50, 2 }
 0x2f4   : >> { %v981_v15 = vadd.f32 %v980_v43, %v979_v50 }
 0x2f6   : >> { %v982_v27 = vrot.slane %v981_v15, 1 }
 0x2f8   : >> { %v983_v49 = vadd.f32 %v982_v27, %v981_v15 }
 0x2fa   : >> { %v1055_v24 = vmax.f32 %v983_v49, 1.0  ;;  %vm1054_vm13 = vcmp.gt.f32.partialorder %v983_v49, 0.5 }
 0x2fc   : >> { %2197 = vrcp.f32 %v1055_v24 }
 0x306   : >> { %v2198_v33 = vpop.eup %2197 }
 0x3be   : > { %449 = sbr.rel (!%p447_p4) target bundleno = 201 (0xc9), region = 106 }
 0x3c0   : >> { %v1050_v30 = vpop.f32.mrb[0].mxu1 }
 0x3c1   : >> { %v1057_v11 = vmul.f32 %v2198_v33, %v1050_v30  ;;  %v2113_v22 = vpop.f32.mrb[1].mxu1 }
 0x3c3   : >> { %v1060_v12 = vsel %vm1054_vm13, %v1057_v11, %v2249_v5  }
 0x3c4   : >> { %v3337_v5 = vmov %v1060_v12  ;;  %2114 = vmatprep.subr.msk.mxu0 (%p447_p4), %vm500_vm2, %v1060_v12  ;;  %1793 = vst.msk [vmem:[%s314_s18] sm:$0xf] (%p447_p4), %vm650_vm3, %v1060_v12  ;;  %2164 = vmatprep.subr.msk.mxu1 (%p447_p4), %vm500_vm2, %v1060_v12  ;;  %v1258_v1 = vmul.f32 (%p447_p4), %v1060_v12, %v1060_v12 }
 0x3c5   : > { %2115 = vmatpush3.msk.msra.mxu0 %vm500_vm2, %v1060_v12  ;;  %2165 = vmatpush3.msk.msra.mxu1 %vm500_vm2, %v1060_v12 }
 0x3c6   : > { %2117 = vmatmul.mubr.msk.f32.vlgmr.msra.gmra.mrb[0].mxu0 %vm395_vm0, %v2333_v3  ;;  %2129 = vmatmul.mubr.msk.f32.vlgmr.msra.gmra.mrb[0].mxu1 %vm395_vm0, %v2389_v26  ;;  %v1260_v2 = vsel %vm650_vm3, %v1258_v1, 0.0 }
 0x3c7   : > { %2119 = vmatprep.mubr.msk.f32.mxu0 %vm395_vm0, %v2350_v7  ;;  %2131 = vmatprep.mubr.msk.f32.mxu1 %vm395_vm0, %v2395_v29  ;;  %v1261_v3 = vrot.slane %v1260_v2, 4 }
 0x3c9   : > { %v1262_v5 = vadd.f32 %v1261_v3, %v1260_v2 }
 0x3ca   : > { %2120 = vmatmul.mubr.msk.f32.gmra.mrb[2].mxu0 %vm395_vm0, %v2358_v10  ;;  %2132 = vmatmul.mubr.msk.f32.gmra.mrb[2].mxu1 %vm395_vm0, %v2401_v32 }
 0x3cb   : > { %2122 = vmatprep.mubr.msk.f32.mxu0 %vm395_vm0, %v2353_v8  ;;  %2134 = vmatprep.mubr.msk.f32.mxu1 %vm395_vm0, %v2407_v35  ;;  %v1263_v7 = vrot.slane %v1262_v5, 2 }
 0x3cd   : > { %v1264_v8 = vadd.f32 %v1263_v7, %v1262_v5 }
 0x3ce   : > { %2123 = vmatmul.mubr.msk.f32.gmra.mrb[4].mxu0 %vm395_vm0, %v2364_v13  ;;  %2135 = vmatmul.mubr.msk.f32.gmra.mrb[4].mxu1 %vm395_vm0, %v2413_v38 }
 0x3cf   : > { %2125 = vmatprep.mubr.msk.f32.mxu0 %vm395_vm0, %v2371_v17  ;;  %2137 = vmatprep.mubr.msk.f32.mxu1 %vm395_vm0, %v2419_v41  ;;  %v1265_v10 = vrot.slane %v1264_v8, 1 }
 0x3d1   : > { %v2821_v13 = vadd.f32 %v1265_v10, %v1264_v8 }
 0x3d2   : > { %2126 = vmatmul.mubr.msk.f32.gmra.mrb[6].mxu0 %vm395_vm0, %v2377_v20  ;;  %2138 = vmatmul.mubr.msk.f32.gmra.mrb[6].mxu1 %vm395_vm0, %v2425_v44 }
 0x3d3   : > { %v1268_v17 = vadd.f32 %v2821_v13, %v2443_v54  ;;  %v1267_v20 = vadd.f32 %v2821_v13, %v2439_v52  ;;  %v1270_v44 = vadd.f32 %v2821_v13, %v2445_v55  ;;  %v1269_v47 = vadd.f32 %v2821_v13, %v2441_v53 }
 0x3d4   : > { %v1272_v51 = vadd.f32 %v2821_v13, %v2449_v57  ;;  %v1275_v55 = vadd.f32 %v2821_v13, %v2455_v60  ;;  %v1271_v46 = vadd.f32 %v2821_v13, %v2447_v56  ;;  %v1273_v57 = vadd.f32 %v2821_v13, %v2451_v58 }
 0x3d5   : > { %v1274_v56 = vadd.f32 %v2821_v13, %v2453_v59  ;;  %v1276_v24 = vadd.f32 %v2821_v13, %v2457_v61  ;;  %v1277_v22 = vadd.f32 %v2821_v13, %v2459_v62 }
 0x499   : > { %v2118_v23 = vpop.f32.mrb[0].mxu0  ;;  %v2130_v35 = vpop.f32.mrb[0].mxu1 }
 0x49a   : > { %v1284_v26 = vmul.f32 2.0, %v2118_v23  ;;  %v1179_v29 = vpop.f32.mrb[1].mxu0  ;;  %v1219_v41 = vpop.f32.mrb[1].mxu1  ;;  %v1292_v3 = vmul.f32 2.0, %v2130_v35 }
 0x49b   : > { %v1283_v32 = vmul.f32 2.0, %v1179_v29  ;;  %v1291_v28 = vmul.f32 2.0, %v1219_v41 }
 0x49c   : > { %v1300_v38 = vsub.f32 %v1268_v17, %v1284_v26 }
 0x49d   : > { %v2121_v31 = vpop.f32.mrb[2].mxu0  ;;  %v1299_v19 = vsub.f32 %v1267_v20, %v1283_v32  ;;  %v2133_v52 = vpop.f32.mrb[2].mxu1  ;;  %v1307_v49 = vsub.f32 %v1275_v55, %v1291_v28  ;;  %v1279_v20 = vadd.f32 %v2821_v13, %v2463_v0 }
 0x49e   : > { %v1286_v39 = vmul.f32 2.0, %v2121_v31  ;;  %v1189_v54 = vpop.f32.mrb[3].mxu0  ;;  %v1316_v45 = vmax.f32 %v1300_v38, 0.0  ;;  %v1229_v37 = vpop.f32.mrb[3].mxu1  ;;  %v1278_v31 = vadd.f32 %v2821_v13, %v2461_v63  ;;  %v1294_v0 = vmul.f32 2.0, %v2133_v52 }
 0x49f   : > { %v1285_v25 = vmul.f32 2.0, %v1189_v54  ;;  %v1315_v21 = vmax.f32 %v1299_v19, 0.0  ;;  %v1293_v11 = vmul.f32 2.0, %v1229_v37  ;;  %v1323_v17 = vmax.f32 %v1307_v49, 0.0  ;;  %v3338_v37 = vld [vmem:[#allocation2_spill] sm:$0xff] }
 0x4a0   : > { %v1302_v4 = vsub.f32 %v1270_v44, %v1286_v39  ;;  %v2847_v60 = vsel %vm2474_vm1, %v1316_v45, 1e+30  ;;  %v1308_v44 = vsub.f32 %v1276_v24, %v1292_v3 }
 0x4a1   : > { %v2124_v48 = vpop.f32.mrb[4].mxu0  ;;  %v2837_v34 = vsel %vm2474_vm1, %v1315_v21, 1e+30  ;;  %v1301_v53 = vsub.f32 %v1269_v47, %v1285_v25  ;;  %v2136_v43 = vpop.f32.mrb[4].mxu1  ;;  %v1351_v2 = vsel %vm738_vm4, %v2847_v60, inf  ;;  %v1309_v35 = vsub.f32 %v1277_v22, %v1293_v11 }
 0x4a2   : > { %v1288_v6 = vmul.f32 2.0, %v2124_v48  ;;  %v1199_v42 = vpop.f32.mrb[5].mxu0  ;;  %v1348_v40 = vsel %vm738_vm4, %v2837_v34, inf  ;;  %v1318_v50 = vmax.f32 %v1302_v4, 0.0  ;;  %v1239_v27 = vpop.f32.mrb[5].mxu1  ;;  %v1281_v25 = vadd.f32 %v2821_v13, %v2467_v9 }
 0x4a3   : > { %v1287_v18 = vmul.f32 2.0, %v1199_v42  ;;  %1349 = vmin.xlane.f32.xlu0 %v1348_v40  ;;  %v1317_v36 = vmax.f32 %v1301_v53, 0.0  ;;  %v1295_v32 = vmul.f32 2.0, %v1239_v27  ;;  %v2885_v54 = vsel %vm2474_vm1, %v1323_v17, 1e+30 }
 0x4a4   : > { %v1304_v15 = vsub.f32 %v1272_v51, %v1288_v6  ;;  %v2865_v5 = vsel %vm2474_vm1, %v1318_v50, 1e+30  ;;  %v1325_v45 = vmax.f32 %v1309_v35, 0.0  ;;  %v1280_v51 = vadd.f32 %v2821_v13, %v3338_v37 }
 0x4a5   : > { %v2127_v33 = vpop.f32.mrb[6].mxu0  ;;  %v2855_v58 = vsel %vm2474_vm1, %v1317_v36, 1e+30  ;;  %v1303_v30 = vsub.f32 %v1271_v46, %v1287_v18  ;;  %v2139_v10 = vpop.f32.mrb[6].mxu1  ;;  %v1357_v38 = vsel %vm738_vm4, %v2865_v5, inf  ;;  %v1311_v52 = vsub.f32 %v1279_v20, %v1295_v32  ;;  %v3339_v18 = vld [vmem:[#allocation3_spill] sm:$0xff] }
 0x4a6   : > { %v1290_v12 = vmul.f32 2.0, %v2127_v33  ;;  %v1209_v1 = vpop.f32.mrb[7].mxu0  ;;  %v1354_v59 = vsel %vm738_vm4, %v2855_v58, inf  ;;  %v1320_v8 = vmax.f32 %v1304_v15, 0.0  ;;  %v1249_v23 = vpop.f32.mrb[7].mxu1  ;;  %v1296_v55 = vmul.f32 2.0, %v2136_v43 }
 0x4a7   : > { %v1289_v61 = vmul.f32 2.0, %v1209_v1  ;;  %1352 = vmin.xlane.f32.xlu0 %v1351_v2  ;;  %1355 = vmin.xlane.f32.xlu1 %v1354_v59  ;;  %v1319_v7 = vmax.f32 %v1303_v30, 0.0  ;;  %v1297_v63 = vmul.f32 2.0, %v1249_v23  ;;  %v1324_v48 = vmax.f32 %v1308_v44, 0.0 }
 0x4a8   : > { %v1306_v62 = vsub.f32 %v1274_v56, %v1290_v12  ;;  %v2881_v19 = vsel %vm2474_vm1, %v1320_v8, 1e+30  ;;  %v1310_v53 = vsub.f32 %v1278_v31, %v1294_v0  ;;  %v1372_v46 = vsel %vm738_vm4, %v2885_v54, inf }
 0x4a9   : > { %v1305_v26 = vsub.f32 %v1273_v57, %v1289_v61  ;;  %v2871_v29 = vsel %vm2474_vm1, %v1319_v7, 1e+30  ;;  %v1363_v28 = vsel %vm738_vm4, %v2881_v19, inf  ;;  %v1313_v6 = vsub.f32 %v1281_v25, %v1297_v63 }
 0x4aa   : > { %v1360_v41 = vsel %vm738_vm4, %v2871_v29, inf  ;;  %v1322_v39 = vmax.f32 %v1306_v62, 0.0  ;;  %v2907_v42 = vsel %vm2474_vm1, %v1325_v45, 1e+30  ;;  %v1327_v40 = vmax.f32 %v1311_v52, 0.0 }
 0x4ab   : > { %1358 = vmin.xlane.f32.xlu1 %v1357_v38  ;;  %1361 = vmin.xlane.f32.xlu0 %v1360_v41  ;;  %v1321_v47 = vmax.f32 %v1305_v26, 0.0  ;;  %v1282_v36 = vadd.f32 %v2821_v13, %v3339_v18  ;;  %v1298_v50 = vmul.f32 2.0, %v2139_v10  ;;  %v2915_v43 = vsel %vm2474_vm1, %v1324_v48, 1e+30 }
 0x4ac   : > { %v2901_v9 = vsel %vm2474_vm1, %v1322_v39, 1e+30  ;;  %v1326_v15 = vmax.f32 %v1310_v53, 0.0  ;;  %v1312_v27 = vsub.f32 %v1280_v51, %v1296_v55  ;;  %v1378_v56 = vsel %vm738_vm4, %v2907_v42, inf }
 0x4ad   : > { %v2891_v21 = vsel %vm2474_vm1, %v1321_v47, 1e+30  ;;  %v1369_v57 = vsel %vm738_vm4, %v2901_v9, inf  ;;  %v2921_v49 = vsel %vm2474_vm1, %v1327_v40, 1e+30  ;;  %v1329_v24 = vmax.f32 %v1313_v6, 0.0 }
 0x4ae   : > { %v1366_v4 = vsel %vm738_vm4, %v2891_v21, inf  ;;  %v1375_v13 = vsel %vm738_vm4, %v2915_v43, inf  ;;  %v2927_v33 = vsel %vm2474_vm1, %v1326_v15, 1e+30  ;;  %v1328_v30 = vmax.f32 %v1312_v27, 0.0 }
 0x4af   : > { %1364 = vmin.xlane.f32.xlu1 %v1363_v28  ;;  %1367 = vmin.xlane.f32.xlu0 %v1366_v4  ;;  %v1314_v11 = vsub.f32 %v1282_v36, %v1298_v50  ;;  %v1384_v22 = vsel %vm738_vm4, %v2921_v49, inf  ;;  %v2933_v12 = vsel %vm2474_vm1, %v1329_v24, 1e+30  ;;  %v1381_v1 = vsel %vm738_vm4, %v2927_v33, inf }
 0x4b0   : > { %v2939_v2 = vsel %vm2474_vm1, %v1328_v30, 1e+30  ;;  %v1390_v3 = vsel %vm738_vm4, %v2933_v12, inf }
 0x4b1   : > { %v1330_v59 = vmax.f32 %v1314_v11, 0.0  ;;  %v1387_v61 = vsel %vm738_vm4, %v2939_v2, inf }
 0x4b3   : > { %1370 = vmin.xlane.f32.xlu1 %v1369_v57  ;;  %1373 = vmin.xlane.f32.xlu0 %v1372_v46  ;;  %v2947_v7 = vsel %vm2474_vm1, %v1330_v59, 1e+30 }
 0x4b4   : > { %v1393_v8 = vsel %vm738_vm4, %v2947_v7, inf }
 0x4b7   : > { %1376 = vmin.xlane.f32.xlu1 %v1375_v13  ;;  %1379 = vmin.xlane.f32.xlu0 %v1378_v56 }
 0x4bb   : > { %1382 = vmin.xlane.f32.xlu1 %v1381_v1  ;;  %1385 = vmin.xlane.f32.xlu0 %v1384_v22 }
 0x4bf   : > { %1388 = vmin.xlane.f32.xlu1 %v1387_v61  ;;  %1391 = vmin.xlane.f32.xlu0 %v1390_v3 }
 0x4c3   : > { %1394 = vmin.xlane.f32.xlu1 %v1393_v8 }
 0x530   : > { %v2951_v10 = vpop.xlane.xlu0 %1349 }
 0x531   : > { %vm1396_vm0 = vcmp.le.f32.partialorder %v2837_v34, %v2951_v10 }
 0x532   : > { %v1412_v62 = vsel %vm1396_vm0, %v2471_v14, 3.0 }
 0x533   : > { %v1428_v17 = vsel %vm738_vm4, %v1412_v62, inf }
 0x534   : > { %v2957_v23 = vpop.xlane.xlu0 %1352  ;;  %v2959_v20 = vpop.xlane.xlu1 %1355  ;;  %1429 = vmin.xlane.f32.xlu0 %v1428_v17 }
 0x535   : > { %vm1397_vm1 = vcmp.le.f32.partialorder %v2847_v60, %v2957_v23  ;;  %vm1398_vm2 = vcmp.le.f32.partialorder %v2855_v58, %v2959_v20  ;;  %v3033_v24 = vmax.f32 %v2957_v23, 0.0  ;;  %v3036_v13 = vmax.f32 %v2959_v20, 0.0 }
 0x536   : > { %v1413_v16 = vsel %vm1397_vm1, %v2471_v14, 3.0  ;;  %v1414_v26 = vsel %vm1398_vm2, %v2471_v14, 3.0 }
 0x537   : > { %v1431_v34 = vsel %vm738_vm4, %v1413_v16, inf  ;;  %v1434_v32 = vsel %vm738_vm4, %v1414_v26, inf  ;;  %v1621_v26 = vand.u32 2147483648, %v3033_v24 }
 0x538   : > { %v2969_v35 = vpop.xlane.xlu1 %1358  ;;  %v2971_v38 = vpop.xlane.xlu0 %1361  ;;  %1432 = vmin.xlane.f32.xlu1 %v1431_v34  ;;  %1435 = vmin.xlane.f32.xlu0 %v1434_v32 }
 0x539   : > { %vm1399_vm3 = vcmp.le.f32.partialorder %v2865_v5, %v2969_v35  ;;  %vm1400_vm14 = vcmp.le.f32.partialorder %v2871_v29, %v2971_v38  ;;  %v3044_v30 = vmax.f32 %v2971_v38, 0.0 }
 0x53a   : > { %v1415_v60 = vsel %vm1399_vm3, %v2471_v14, 3.0  ;;  %v1416_v58 = vsel %vm1400_vm14, %v2471_v14, 3.0  ;;  %vm1618_vm3 = vcmp.eq.f32.partialorder %v3033_v24, inf  ;;  %vm1620_vm14 = vcmp.eq.f32.partialorder %v3033_v24, 0.0 }
 0x53b   : > { %v1437_v41 = vsel %vm738_vm4, %v1415_v60, inf  ;;  %v1440_v44 = vsel %vm738_vm4, %v1416_v58, inf }
 0x53c   : > { %v2981_v31 = vpop.xlane.xlu1 %1364  ;;  %1438 = vmin.xlane.f32.xlu1 %v1437_v41  ;;  %1441 = vmin.xlane.f32.xlu0 %v1440_v44  ;;  %v2983_v0 = vpop.xlane.xlu0 %1367 }
 0x53d   : > { %vm1401_vm15 = vcmp.le.f32.partialorder %v2881_v19, %v2981_v31  ;;  %vm1402_vm5 = vcmp.le.f32.partialorder %v2891_v21, %v2983_v0  ;;  %v3048_v11 = vmax.f32 %v2981_v31, 0.0  ;;  %v3052_v22 = vmax.f32 %v2983_v0, 0.0 }
 0x53e   : > { %v1417_v5 = vsel %vm1401_vm15, %v2471_v14, 3.0  ;;  %v1418_v29 = vsel %vm1402_vm5, %v2471_v14, 3.0  ;;  %vm1625_vm15 = vcmp.eq.f32.partialorder %v3036_v13, inf  ;;  %vm1627_vm5 = vcmp.eq.f32.partialorder %v3036_v13, 0.0 }
 0x53f   : > { %v1443_v47 = vsel %vm738_vm4, %v1417_v5, inf  ;;  %v1446_v39 = vsel %vm738_vm4, %v1418_v29, inf  ;;  %v1642_v29 = vand.u32 2147483648, %v3044_v30 }
 0x540   : > { %1444 = vmin.xlane.f32.xlu1 %v1443_v47  ;;  %v1371_v25 = vpop.xlane.xlu1 %1370  ;;  %1447 = vmin.xlane.f32.xlu0 %v1446_v39  ;;  %v1374_v63 = vpop.xlane.xlu0 %1373 }
 0x541   : > { %vm1403_vm6 = vcmp.le.f32.partialorder %v2901_v9, %v1371_v25  ;;  %vm1404_vm7 = vcmp.le.f32.partialorder %v2885_v54, %v1374_v63  ;;  %v3059_v1 = vmax.f32 %v1374_v63, 0.0 }
 0x542   : > { %v1419_v19 = vsel %vm1403_vm6, %v2471_v14, 3.0  ;;  %v1420_v21 = vsel %vm1404_vm7, %v2471_v14, 3.0 }
 0x543   : > { %v1449_v45 = vsel %vm738_vm4, %v1419_v19, inf  ;;  %v1452_v52 = vsel %vm738_vm4, %v1420_v21, inf }
 0x544   : > { %1450 = vmin.xlane.f32.xlu1 %v1449_v45  ;;  %v1377_v28 = vpop.xlane.xlu1 %1376  ;;  %1453 = vmin.xlane.f32.xlu0 %v1452_v52  ;;  %v1380_v4 = vpop.xlane.xlu0 %1379 }
 0x545   : > { %vm1405_vm8 = vcmp.le.f32.partialorder %v2915_v43, %v1377_v28  ;;  %vm1406_vm9 = vcmp.le.f32.partialorder %v2907_v42, %v1380_v4  ;;  %v3064_v59 = vmax.f32 %v1380_v4, 0.0 }
 0x546   : > { %v1421_v37 = vsel %vm1405_vm8, %v2471_v14, 3.0  ;;  %v1422_v54 = vsel %vm1406_vm9, %v2471_v14, 3.0  ;;  %vm1639_vm8 = vcmp.eq.f32.partialorder %v3044_v30, inf  ;;  %vm1641_vm9 = vcmp.eq.f32.partialorder %v3044_v30, 0.0 }
 0x547   : > { %v1455_v51 = vsel %vm738_vm4, %v1421_v37, inf  ;;  %v1458_v55 = vsel %vm738_vm4, %v1422_v54, inf  ;;  %v1649_v54 = vand.u32 2147483648, %v3048_v11 }
 0x548   : > { %1456 = vmin.xlane.f32.xlu1 %v1455_v51  ;;  %v1383_v9 = vpop.xlane.xlu1 %1382  ;;  %1459 = vmin.xlane.f32.xlu0 %v1458_v55  ;;  %v1386_v48 = vpop.xlane.xlu0 %1385 }
 0x549   : > { %vm1407_vm10 = vcmp.le.f32.partialorder %v2927_v33, %v1383_v9  ;;  %vm1408_vm11 = vcmp.le.f32.partialorder %v2921_v49, %v1386_v48  ;;  %v3030_v49 = vmax.f32 %v2951_v10, 0.0  ;;  %v3039_v33 = vmax.f32 %v2969_v35, 0.0 }
 0x54a   : > { %v1423_v53 = vsel %vm1407_vm10, %v2471_v14, 3.0  ;;  %v1424_v46 = vsel %vm1408_vm11, %v2471_v14, 3.0  ;;  %v3066_v61 = vmax.f32 %v1383_v9, 0.0  ;;  %v3075_v17 = vmax.f32 %v1386_v48, 0.0 }
 0x54b   : > { %v1461_v6 = vsel %vm738_vm4, %v1423_v53, inf  ;;  %v1464_v42 = vsel %vm738_vm4, %v1424_v46, inf  ;;  %2199 = vrsqrt.f32 %v3030_v49  ;;  %vm1611_vm1 = vcmp.eq.f32.partialorder %v3030_v49, inf }
 0x54c   : > { %1462 = vmin.xlane.f32.xlu1 %v1461_v6  ;;  %v3011_v40 = vpop.xlane.xlu1 %1388  ;;  %1465 = vmin.xlane.f32.xlu0 %v1464_v42  ;;  %v3013_v57 = vpop.xlane.xlu0 %1391  ;;  %2201 = vrsqrt.f32 %v3033_v24  ;;  %vm1613_vm2 = vcmp.eq.f32.partialorder %v3030_v49, 0.0  ;;  %v1614_v62 = vand.u32 2147483648, %v3030_v49  ;;  %v1628_v35 = vand.u32 2147483648, %v3036_v13 }
 0x54d   : > { %vm1409_vm12 = vcmp.le.f32.partialorder %v2939_v2, %v3011_v40  ;;  %vm1410_vm13 = vcmp.le.f32.partialorder %v2933_v12, %v3013_v57  ;;  %2203 = vrsqrt.f32 %v3036_v13  ;;  %v3054_v12 = vmax.f32 %v1371_v25, 0.0 }
 0x54e   : > { %v1425_v18 = vsel %vm1409_vm12, %v2471_v14, 3.0  ;;  %v1426_v36 = vsel %vm1410_vm13, %v2471_v14, 3.0  ;;  %2205 = vrsqrt.f32 %v3039_v33  ;;  %v3062_v2 = vmax.f32 %v1377_v28, 0.0 }
 0x54f   : > { %v1467_v50 = vsel %vm738_vm4, %v1425_v18, inf  ;;  %v1470_v43 = vsel %vm738_vm4, %v1426_v36, inf  ;;  %2207 = vrsqrt.f32 %v3044_v30  ;;  %vm1632_vm6 = vcmp.eq.f32.partialorder %v3039_v33, inf }
 0x550   : > { %1468 = vmin.xlane.f32.xlu1 %v1467_v50  ;;  %v3023_v15 = vpop.xlane.xlu1 %1394  ;;  %1471 = vmin.xlane.f32.xlu0 %v1470_v43  ;;  %2209 = vrsqrt.f32 %v3048_v11  ;;  %vm1634_vm7 = vcmp.eq.f32.partialorder %v3039_v33, 0.0  ;;  %v1635_v58 = vand.u32 2147483648, %v3039_v33  ;;  %v3098_v0 = vmax.f32 %v3011_v40, 0.0 }
 0x551   : > { %vm1411_vm0 = vcmp.le.f32.partialorder %v2947_v7, %v3023_v15  ;;  %2211 = vrsqrt.f32 %v3052_v22  ;;  %vm1646_vm10 = vcmp.eq.f32.partialorder %v3048_v11, inf  ;;  %vm1648_vm11 = vcmp.eq.f32.partialorder %v3048_v11, 0.0 }
 0x552   : > { %v1427_v27 = vsel %vm1411_vm0, %v2471_v14, 3.0  ;;  %2213 = vrsqrt.f32 %v3054_v12  ;;  %v3112_v19 = vmax.f32 %v3013_v57, 0.0  ;;  %vm1653_vm12 = vcmp.eq.f32.partialorder %v3052_v22, inf }
 0x553   : > { %v1473_v56 = vsel %vm738_vm4, %v1427_v27, inf  ;;  %2215 = vrsqrt.f32 %v3059_v1  ;;  %vm1655_vm13 = vcmp.eq.f32.partialorder %v3052_v22, 0.0  ;;  %v3138_v53 = vmax.f32 %v3023_v15, 0.0 }
 0x554   : > { %1474 = vmin.xlane.f32.xlu1 %v1473_v56  ;;  %2217 = vrsqrt.f32 %v3062_v2  ;;  %vm1660_vm0 = vcmp.eq.f32.partialorder %v3054_v12, inf  ;;  %v1656_v18 = vand.u32 2147483648, %v3052_v22  ;;  %v1663_v36 = vand.u32 2147483648, %v3054_v12 }
 0x555   : > { %v2200_v3 = vpop.eup %2199  ;;  %2219 = vrsqrt.f32 %v3064_v59 }
 0x556   : > { %v2202_v7 = vpop.eup %2201  ;;  %2221 = vrsqrt.f32 %v3066_v61  ;;  %v1610_v23 = vmul.f32 %v2200_v3, %v3030_v49  ;;  %v1684_v3 = vand.u32 2147483648, %v3064_v59 }
 0x557   : > { %v2204_v8 = vpop.eup %2203  ;;  %v1617_v16 = vmul.f32 %v2202_v7, %v3033_v24  ;;  %2223 = vrsqrt.f32 %v3075_v17 }
 0x558   : > { %v2206_v10 = vpop.eup %2205  ;;  %v1624_v32 = vmul.f32 %v2204_v8, %v3036_v13  ;;  %v1612_v44 = vsel %vm1611_vm1, %v3030_v49, %v1610_v23  ;;  %2225 = vrsqrt.f32 %v3098_v0  ;;  %vm1662_vm1 = vcmp.eq.f32.partialorder %v3054_v12, 0.0 }
 0x559   : > { %v2208_v20 = vpop.eup %2207  ;;  %v1631_v38 = vmul.f32 %v2206_v10, %v3039_v33  ;;  %v1619_v5 = vsel %vm1618_vm3, %v3033_v24, %v1617_v16  ;;  %v1615_v21 = vsel %vm1613_vm2, %v1614_v62, %v1612_v44  ;;  %2227 = vrsqrt.f32 %v3112_v19 }
 0x55a   : > { %v2210_v34 = vpop.eup %2209  ;;  %v1638_v31 = vmul.f32 %v2208_v20, %v3044_v30  ;;  %v1626_v47 = vsel %vm1625_vm15, %v3036_v13, %v1624_v32  ;;  %v3120_v4 = vsel %vm1620_vm14, %v1621_v26, %v1619_v5  ;;  %vm1667_vm2 = vcmp.eq.f32.partialorder %v3059_v1, inf }
 0x55b   : > { %v2212_v60 = vpop.eup %2211  ;;  %v1633_v39 = vsel %vm1632_vm6, %v3039_v33, %v1631_v38  ;;  %v1645_v25 = vmul.f32 %v2210_v34, %v3048_v11  ;;  %v3130_v55 = vsel %vm1627_vm5, %v1628_v35, %v1626_v47  ;;  %2229 = vrsqrt.f32 %v3138_v53 }
 0x55c   : > { %v2214_v41 = vpop.eup %2213  ;;  %v1652_v45 = vmul.f32 %v2212_v60, %v3052_v22  ;;  %v1640_v37 = vsel %vm1639_vm8, %v3044_v30, %v1638_v31  ;;  %v3134_v9 = vsel %vm1634_vm7, %v1635_v58, %v1633_v39  ;;  %vm1669_vm3 = vcmp.eq.f32.partialorder %v3059_v1, 0.0 }
 0x55d   : > { %v2216_v63 = vpop.eup %2215  ;;  %v1659_v52 = vmul.f32 %v2214_v41, %v3054_v12  ;;  %v1647_v46 = vsel %vm1646_vm10, %v3048_v11, %v1645_v25  ;;  %v3148_v42 = vsel %vm1641_vm9, %v1642_v29, %v1640_v37  ;;  %v1670_v33 = vand.u32 2147483648, %v3059_v1 }
 0x55e   : > { %v2218_v28 = vpop.eup %2217  ;;  %v1666_v6 = vmul.f32 %v2216_v63, %v3059_v1  ;;  %v1654_v40 = vsel %vm1653_vm12, %v3052_v22, %v1652_v45  ;;  %v3158_v15 = vsel %vm1648_vm11, %v1649_v54, %v1647_v46  ;;  %vm1674_vm14 = vcmp.eq.f32.partialorder %v3062_v2, inf }
 0x55f   : > { %v2220_v51 = vpop.eup %2219  ;;  %v1661_v57 = vsel %vm1660_vm0, %v3054_v12, %v1659_v52  ;;  %v1673_v50 = vmul.f32 %v2218_v28, %v3062_v2  ;;  %v3166_v49 = vsel %vm1655_vm13, %v1656_v18, %v1654_v40  ;;  %vm1681_vm15 = vcmp.eq.f32.partialorder %v3064_v59, inf }
 0x560   : > { %v2222_v48 = vpop.eup %2221  ;;  %v1680_v43 = vmul.f32 %v2220_v51, %v3064_v59  ;;  %v3168_v24 = vsel %vm1662_vm1, %v1663_v36, %v1661_v57  ;;  %v1668_v13 = vsel %vm1667_vm2, %v3059_v1, %v1666_v6  ;;  %v1677_v12 = vand.u32 2147483648, %v3062_v2 }
 0x561   : > { %v1687_v27 = vmul.f32 %v2222_v48, %v3066_v61  ;;  %v2224_v56 = vpop.eup %2223  ;;  %v1675_v11 = vsel %vm1674_vm14, %v3062_v2, %v1673_v50  ;;  %vm1688_vm5 = vcmp.eq.f32.partialorder %v3066_v61, inf  ;;  %v2260_v10 = vmov 0.0  }
 0x562   : > { %v1682_v22 = vsel %vm1681_vm15, %v3064_v59, %v1680_v43  ;;  %v1694_v8 = vmul.f32 %v2224_v56, %v3075_v17  ;;  %vm1676_vm7 = vcmp.eq.f32.partialorder %v3062_v2, 0.0  ;;  %vm1683_vm8 = vcmp.eq.f32.partialorder %v3064_v59, 0.0  ;;  %v2226_v20 = vpop.eup %2225 }
 0x563   : > { %v1689_v7 = vsel %vm1688_vm5, %v3066_v61, %v1687_v27  ;;  %v1691_v23 = vand.u32 2147483648, %v3066_v61  ;;  %v3189_v16 = vsel %vm1669_vm3, %v1670_v33, %v1668_v13  ;;  %v3191_v26 = vsel %vm1676_vm7, %v1677_v12, %v1675_v11  ;;  %v2228_v2 = vpop.eup %2227 }
 0x564   : > { %v3193_v34 = vsel %vm1683_vm8, %v1684_v3, %v1682_v22  ;;  %vm1690_vm9 = vcmp.eq.f32.partialorder %v3066_v61, 0.0  ;;  %vm1695_vm10 = vcmp.eq.f32.partialorder %v3075_v17, inf  ;;  %vm1697_vm11 = vcmp.eq.f32.partialorder %v3075_v17, 0.0 }
 0x565   : > { %v3196_v60 = vsel %vm1690_vm9, %v1691_v23, %v1689_v7  ;;  %v1696_v1 = vsel %vm1695_vm10, %v3075_v17, %v1694_v8  ;;  %v1698_v59 = vand.u32 2147483648, %v3075_v17  ;;  %v1701_v41 = vmul.f32 %v2226_v20, %v3098_v0  ;;  %v3213_v47 = vpop.eup %2229 }
 0x566   : > { %vm1702_vm0 = vcmp.eq.f32.partialorder %v3098_v0, inf  ;;  %vm1704_vm1 = vcmp.eq.f32.partialorder %v3098_v0, 0.0  ;;  %v1705_v45 = vand.u32 2147483648, %v3098_v0  ;;  %v1708_v52 = vmul.f32 %v2228_v2, %v3112_v19 }
 0x567   : > { %v3230_v43 = vsel %vm1697_vm11, %v1698_v59, %v1696_v1  ;;  %v1703_v27 = vsel %vm1702_vm0, %v3098_v0, %v1701_v41  ;;  %vm1709_vm5 = vcmp.eq.f32.partialorder %v3112_v19, inf  ;;  %vm1711_vm8 = vcmp.eq.f32.partialorder %v3112_v19, 0.0 }
 0x568   : > { %v3247_v23 = vsel %vm1704_vm1, %v1705_v45, %v1703_v27  ;;  %vm1716_vm11 = vcmp.eq.f32.partialorder %v3138_v53, inf }
 0x5c1   : > { %v1430_v30 = vpop.xlane.xlu0 %1429 }
 0x5c2   : > { %vm1476_vm6 = vcmp.eq.f32.partialorder %v2471_v14, %v1430_v30 }
 0x5c3   : > { %v1540_v62 = vsel %vm1476_vm6, 1.0, %v2260_v10 }
 0x5c4   : > { %v1737_v32 = vmul.f32 %v1615_v21, %v1540_v62  ;;  %v1556_v44 = vsel %vm738_vm4, %v1540_v62, 0.0 }
 0x5c5   : > { %v1433_v35 = vpop.xlane.xlu1 %1432  ;;  %v1436_v38 = vpop.xlane.xlu0 %1435 }
 0x5c6   : > { %vm1477_vm12 = vcmp.eq.f32.partialorder %v2471_v14, %v1433_v35  ;;  %vm1478_vm13 = vcmp.eq.f32.partialorder %v2471_v14, %v1436_v38  ;;  %v1753_v39 = vsel %vm738_vm4, %v1737_v32, 0.0 }
 0x5c7   : > { %v1541_v61 = vsel %vm1477_vm12, 1.0, %v2260_v10  ;;  %v1542_v58 = vsel %vm1478_vm13, 1.0, %v2260_v10 }
 0x5c8   : > { %v1557_v31 = vsel %vm738_vm4, %v1541_v61, 0.0  ;;  %v1738_v5 = vmul.f32 %v3120_v4, %v1541_v61  ;;  %v1739_v29 = vmul.f32 %v3130_v55, %v1542_v58  ;;  %v1559_v37 = vsel %vm738_vm4, %v1542_v58, 0.0 }
 0x5c9   : > { %v1558_v25 = vadd.f32 %v1557_v31, %v1556_v44  ;;  %v1439_v63 = vpop.xlane.xlu1 %1438  ;;  %v1442_v21 = vpop.xlane.xlu0 %1441  ;;  %v1710_v31 = vsel %vm1709_vm5, %v3112_v19, %v1708_v52 }
 0x5ca   : > { %v1754_v28 = vsel %vm738_vm4, %v1738_v5, 0.0  ;;  %vm1479_vm2 = vcmp.eq.f32.partialorder %v2471_v14, %v1439_v63  ;;  %vm1480_vm3 = vcmp.eq.f32.partialorder %v2471_v14, %v1442_v21  ;;  %v1756_v48 = vsel %vm738_vm4, %v1739_v29, 0.0 }
 0x5cb   : > { %v1755_v4 = vadd.f32 %v1754_v28, %v1753_v39  ;;  %v1560_v54 = vadd.f32 %v1559_v37, %v1558_v25  ;;  %v1543_v51 = vsel %vm1479_vm2, 1.0, %v2260_v10  ;;  %v1544_v55 = vsel %vm1480_vm3, 1.0, %v2260_v10 }
 0x5cc   : > { %v1561_v46 = vsel %vm738_vm4, %v1543_v51, 0.0  ;;  %v1740_v6 = vmul.f32 %v3134_v9, %v1543_v51  ;;  %v1741_v40 = vmul.f32 %v3148_v42, %v1544_v55  ;;  %v1563_v13 = vsel %vm738_vm4, %v1544_v55, 0.0 }
 0x5cd   : > { %v1757_v57 = vadd.f32 %v1756_v48, %v1755_v4  ;;  %v1562_v18 = vadd.f32 %v1561_v46, %v1560_v54  ;;  %v1445_v36 = vpop.xlane.xlu1 %1444  ;;  %v1448_v50 = vpop.xlane.xlu0 %1447  ;;  %v1712_v5 = vand.u32 2147483648, %v3112_v19  ;;  %v1715_v55 = vmul.f32 %v3213_v47, %v3138_v53 }
 0x5ce   : > { %v1758_v56 = vsel %vm738_vm4, %v1740_v6, 0.0  ;;  %vm1481_vm14 = vcmp.eq.f32.partialorder %v2471_v14, %v1445_v36  ;;  %vm1482_vm15 = vcmp.eq.f32.partialorder %v2471_v14, %v1448_v50  ;;  %v1760_v30 = vsel %vm738_vm4, %v1741_v40, 0.0 }
 0x5cf   : > { %v1759_v9 = vadd.f32 %v1758_v56, %v1757_v57  ;;  %v1564_v42 = vadd.f32 %v1563_v13, %v1562_v18  ;;  %v1545_v33 = vsel %vm1481_vm14, 1.0, %v2260_v10  ;;  %v1546_v17 = vsel %vm1482_vm15, 1.0, %v2260_v10 }
 0x5d0   : > { %v1565_v11 = vsel %vm738_vm4, %v1545_v33, 0.0  ;;  %v1742_v12 = vmul.f32 %v3158_v15, %v1545_v33  ;;  %v1743_v22 = vmul.f32 %v3166_v49, %v1546_v17  ;;  %v1567_v32 = vsel %vm738_vm4, %v1546_v17, 0.0 }
 0x5d1   : > { %v1761_v3 = vadd.f32 %v1760_v30, %v1759_v9  ;;  %v1566_v7 = vadd.f32 %v1565_v11, %v1564_v42  ;;  %v1451_v8 = vpop.xlane.xlu1 %1450  ;;  %v1454_v62 = vpop.xlane.xlu0 %1453  ;;  %v1713_v13 = vsel %vm1711_vm8, %v1712_v5, %v1710_v31  ;;  %v1717_v42 = vsel %vm1716_vm11, %v3138_v53, %v1715_v55 }
 0x5d2   : > { %v1762_v20 = vsel %vm738_vm4, %v1742_v12, 0.0  ;;  %vm1483_vm6 = vcmp.eq.f32.partialorder %v2471_v14, %v1451_v8  ;;  %vm1484_vm7 = vcmp.eq.f32.partialorder %v2471_v14, %v1454_v62  ;;  %v1764_v0 = vsel %vm738_vm4, %v1743_v22, 0.0 }
 0x5d3   : > { %v1763_v15 = vadd.f32 %v1762_v20, %v1761_v3  ;;  %v1568_v49 = vadd.f32 %v1567_v32, %v1566_v7  ;;  %v1547_v35 = vsel %vm1483_vm6, 1.0, %v2260_v10  ;;  %v1548_v38 = vsel %vm1484_vm7, 1.0, %v2260_v10 }
 0x5d4   : > { %v1569_v2 = vsel %vm738_vm4, %v1547_v35, 0.0  ;;  %v1744_v1 = vmul.f32 %v3168_v24, %v1547_v35  ;;  %v1745_v59 = vmul.f32 %v3189_v16, %v1548_v38  ;;  %v1571_v39 = vsel %vm738_vm4, %v1548_v38, 0.0 }
 0x5d5   : > { %v1765_v61 = vadd.f32 %v1764_v0, %v1763_v15  ;;  %v1570_v58 = vadd.f32 %v1569_v2, %v1568_v49  ;;  %v1457_v41 = vpop.xlane.xlu1 %1456  ;;  %v1460_v44 = vpop.xlane.xlu0 %1459  ;;  %v1719_v62 = vand.u32 2147483648, %v3138_v53  ;;  %vm1718_vm2 = vcmp.eq.f32.partialorder %v3138_v53, 0.0 }
 0x5d6   : > { %v1766_v29 = vsel %vm738_vm4, %v1744_v1, 0.0  ;;  %vm1485_vm9 = vcmp.eq.f32.partialorder %v2471_v14, %v1457_v41  ;;  %vm1486_vm10 = vcmp.eq.f32.partialorder %v2471_v14, %v1460_v44  ;;  %v1768_v21 = vsel %vm738_vm4, %v1745_v59, 0.0 }
 0x5d7   : > { %v1767_v24 = vadd.f32 %v1766_v29, %v1765_v61  ;;  %v1572_v16 = vadd.f32 %v1571_v39, %v1570_v58  ;;  %v1549_v25 = vsel %vm1485_vm9, 1.0, %v2260_v10  ;;  %v1550_v63 = vsel %vm1486_vm10, 1.0, %v2260_v10 }
 0x5d8   : > { %v1573_v45 = vsel %vm738_vm4, %v1549_v25, 0.0  ;;  %v1746_v52 = vmul.f32 %v3191_v26, %v1549_v25  ;;  %v1747_v28 = vmul.f32 %v3193_v34, %v1550_v63  ;;  %v1575_v46 = vsel %vm738_vm4, %v1550_v63, 0.0 }
 0x5d9   : > { %v1769_v37 = vadd.f32 %v1768_v21, %v1767_v24  ;;  %v1574_v4 = vadd.f32 %v1573_v45, %v1572_v16  ;;  %v1463_v54 = vpop.xlane.xlu1 %1462  ;;  %v1466_v51 = vpop.xlane.xlu0 %1465  ;;  %v1720_v38 = vsel %vm1718_vm2, %v1719_v62, %v1717_v42  ;;  %vm1790_vm14 = vcmask 16384  }
 0x5da   : > { %v1770_v48 = vsel %vm738_vm4, %v1746_v52, 0.0  ;;  %vm1487_vm12 = vcmp.eq.f32.partialorder %v2471_v14, %v1463_v54  ;;  %vm1488_vm13 = vcmp.eq.f32.partialorder %v2471_v14, %v1466_v51  ;;  %v1772_v57 = vsel %vm738_vm4, %v1747_v28, 0.0 }
 0x5db   : > { %v1771_v26 = vadd.f32 %v1770_v48, %v1769_v37  ;;  %v1576_v6 = vadd.f32 %v1575_v46, %v1574_v4  ;;  %v1551_v34 = vsel %vm1487_vm12, 1.0, %v2260_v10  ;;  %v1552_v40 = vsel %vm1488_vm13, 1.0, %v2260_v10 }
 0x5dc   : > { %v1577_v47 = vsel %vm738_vm4, %v1551_v34, 0.0  ;;  %v1748_v18 = vmul.f32 %v3196_v60, %v1551_v34  ;;  %v1749_v36 = vmul.f32 %v3230_v43, %v1552_v40  ;;  %v1579_v17 = vsel %vm738_vm4, %v1552_v40, 0.0 }
 0x5dd   : > { %v1773_v50 = vadd.f32 %v1772_v57, %v1771_v26  ;;  %v1578_v27 = vadd.f32 %v1577_v47, %v1576_v6  ;;  %v1469_v56 = vpop.xlane.xlu1 %1468  ;;  %v1472_v9 = vpop.xlane.xlu0 %1471 }
 0x5de   : > { %v1774_v33 = vsel %vm738_vm4, %v1748_v18, 0.0  ;;  %vm1489_vm0 = vcmp.eq.f32.partialorder %v2471_v14, %v1469_v56  ;;  %vm1490_vm1 = vcmp.eq.f32.partialorder %v2471_v14, %v1472_v9  ;;  %v1776_v11 = vsel %vm738_vm4, %v1749_v36, 0.0 }
 0x5df   : > { %v1775_v60 = vadd.f32 %v1774_v33, %v1773_v50  ;;  %v1580_v43 = vadd.f32 %v1579_v17, %v1578_v27  ;;  %v1553_v30 = vsel %vm1489_vm0, 1.0, %v2260_v10  ;;  %v1554_v19 = vsel %vm1490_vm1, 1.0, %v2260_v10 }
 0x5e0   : > { %v1581_v12 = vsel %vm738_vm4, %v1553_v30, 0.0  ;;  %v1750_v22 = vmul.f32 %v3247_v23, %v1553_v30  ;;  %v1751_v3 = vmul.f32 %v1713_v13, %v1554_v19  ;;  %v1583_v15 = vsel %vm738_vm4, %v1554_v19, 0.0 }
 0x5e1   : > { %v1777_v7 = vadd.f32 %v1776_v11, %v1775_v60  ;;  %v1582_v8 = vadd.f32 %v1581_v12, %v1580_v43  ;;  %v1475_v20 = vpop.xlane.xlu1 %1474 }
 0x5e2   : > { %v1778_v32 = vsel %vm738_vm4, %v1750_v22, 0.0  ;;  %vm1491_vm3 = vcmp.eq.f32.partialorder %v2471_v14, %v1475_v20  ;;  %v1780_v23 = vsel %vm738_vm4, %v1751_v3, 0.0 }
 0x5e3   : > { %v1779_v49 = vadd.f32 %v1778_v32, %v1777_v7  ;;  %v1584_v35 = vadd.f32 %v1583_v15, %v1582_v8  ;;  %v1555_v0 = vsel %vm1491_vm3, 1.0, %v2260_v10 }
 0x5e4   : > { %v1585_v2 = vsel %vm738_vm4, %v1555_v0, 0.0  ;;  %v1752_v1 = vmul.f32 %v1720_v38, %v1555_v0 }
 0x5e5   : > { %v1781_v59 = vadd.f32 %v1780_v23, %v1779_v49  ;;  %v1586_v61 = vadd.f32 %v1585_v2, %v1584_v35 }
 0x5e6   : > { %v1782_v58 = vsel %vm738_vm4, %v1752_v1, 0.0 }
 0x5e7   : > { %v1587_v41 = vrot.slane %v1586_v61, 4  ;;  %v1783_v53 = vadd.f32 %v1782_v58, %v1781_v59 }
 0x5e9   : > { %v1588_v44 = vadd.f32 %v1587_v41, %v1586_v61  ;;  %v1784_v14 = vrot.slane %v1783_v53, 4 }
 0x5eb   : > { %v1589_v31 = vrot.slane %v1588_v44, 2  ;;  %v1785_v5 = vadd.f32 %v1784_v14, %v1783_v53 }
 0x5ed   : > { %v1590_v29 = vadd.f32 %v1589_v31, %v1588_v44  ;;  %v1786_v39 = vrot.slane %v1785_v5, 2 }
 0x5ef   : > { %v1591_v10 = vrot.slane %v1590_v29, 1  ;;  %v1787_v24 = vadd.f32 %v1786_v39, %v1785_v5 }
 0x5f1   : > { %v1592_v16 = vadd.f32 %v1591_v10, %v1590_v29  ;;  %v1788_v25 = vrot.slane %v1787_v24, 1 }
 0x5f3   : > { %v1789_v63 = vadd.f32 %v1788_v25, %v1787_v24  ;;  %1792 = vst.msk [vmem:[%s310_s15] sm:$0x1] %vm1790_vm14, %v1592_v16 }
 0x5f5   : > { %1791 = vst.msk [vmem:[%s307_s12] sm:$0x1] %vm1790_vm14, %v1789_v63 }
 0x5f6 PF: > { %s17_s21 = sadd.s32 1, %s2245_s21  }
 0x5f7   : > { %p14_p5 = scmp.ge.s32.totalorder %s17_s21, 4  }
 0x5f9   :  { %16 = sbr.rel (!%p14_p5) target bundleno = 1 (0x1), region = 117 }

</bundles_post_ra>
